<compile_context>
chip_gen: v7x
topology: tpu7x:2x2x1
jax: 0.10.0
libtpu: 0.0.40
codegen_flags: <defaults>
</compile_context>

<pallas_src>
import jax
import jax.numpy as jnp
from jax import lax
from jax.experimental import pallas as pl
from jax.experimental.pallas import tpu as pltpu

LEAKY_SLOPE = 0.01   # F.leaky_relu default negative_slope
BN_EPS = 1e-5        # nn.BatchNorm2d default eps
K = 3                # kernel_size
P = 1                # padding
LANE = 128


def _round_up(x, m):
    return (x + m - 1) // m * m


def _conv_stats_kernel(xp_ref, w_ref, b_ref, y_ref, st_ref, patch_ref):
    """Per batch element: im2col + one MXU matmul + bias, plus BN1 partial sums."""
    _, Hp, Wp, Cin = xp_ref.shape
    H, W = Hp - 2 * P, Wp - 2 * P

    xp = xp_ref[0].astype(jnp.float32)                       # (H+2, W+2, Cin)

    # im2col slab (H*W, K*K*Cin): 9 static shifted slices stored at static lane
    # offsets; the slab scratch is bf16, so stores downcast in place (no slab-wide
    # cast at matmul time).
    for dy in range(K):
        for dx in range(K):
            j = (dy * K + dx) * Cin
            patch_ref[:, j:j + Cin] = (
                xp[dy:dy + H, dx:dx + W, :].reshape(H * W, Cin).astype(jnp.bfloat16))

    # Single matmul: (H*W, 9*Cin) x (9*Cin, Cp), bf16 operands, f32 accumulation.
    acc = jnp.dot(patch_ref[...], w_ref[...],
                  preferred_element_type=jnp.float32)
    acc = acc + b_ref[...]                                   # conv bias (1, Cp)
    y_ref[0] = acc                                           # lane-dense (H*W, Cp)

    # Per-batch partial sums for BN1 batch statistics (saves an HBM pass over conv_out).
    st_ref[0, 0:1, :] = jnp.sum(acc, axis=0, keepdims=True)
    st_ref[0, 1:2, :] = jnp.sum(acc * acc, axis=0, keepdims=True)


def _bn1_act_kernel(y_ref, s_ref, b_ref, o_ref):
    """Per batch element: BN1 affine + leaky_relu (lane-dense, in place via aliasing)."""
    y = y_ref[0] * s_ref[...] + b_ref[...]
    o_ref[0] = jnp.maximum(y, LEAKY_SLOPE * y)


def inconv_forward(x_nchw, params):
    gamma0, beta0 = params["gamma0"], params["beta0"]
    w_hwio, conv_b = params["w_hwio"], params["conv_b"]
    gamma1, beta1 = params["gamma1"], params["beta1"]

    N, Cin, H, W = x_nchw.shape
    Cout = w_hwio.shape[3]
    Cp = _round_up(Cout, LANE)              # lane-dense padded output channels
    HW = H * W
    KKC = K * K * Cin

    x = jnp.transpose(x_nchw, (0, 2, 3, 1)).astype(jnp.float32)   # NHWC

    # ---- BN0 (training mode) + zero-pad, once in HBM -------------------------
    # Padding the *normalized* input once in HBM removes any per-step memset /
    # unaligned interior copy from the kernel.
    mean0 = jnp.mean(x, axis=(0, 1, 2))
    var0 = jnp.var(x, axis=(0, 1, 2))       # biased variance, as used for normalization
    inv0 = gamma0 / jnp.sqrt(var0 + BN_EPS)
    xn = x * inv0 + (beta0 - mean0 * inv0)
    x_pad = jnp.pad(xn, ((0, 0), (P, P), (P, P), (0, 0))).astype(jnp.bfloat16)

    # Flattened (im2col-ordered) weights / bias, zero-padded on the Cout axis.
    w2 = jnp.pad(w_hwio.reshape(KKC, Cout).astype(jnp.float32),
                 ((0, 0), (0, Cp - Cout))).astype(jnp.bfloat16)
    cb = jnp.pad(conv_b.astype(jnp.float32), (0, Cp - Cout)).reshape(1, Cp)

    # ---- conv (+ BN1 partial sums) kernel -------------------------------------
    xpad_blk = (H + 2 * P) * (W + 2 * P) * Cin * 2
    y_blk = HW * Cp * 4
    vmem_bytes = int(min(64 << 20,
                         max(32 << 20,
                             2 * (xpad_blk + y_blk) + HW * KKC * 2 + (4 << 20))))

    conv_out, stats = pl.pallas_call(
        _conv_stats_kernel,
        out_shape=(jax.ShapeDtypeStruct((N, HW, Cp), jnp.float32),
                   jax.ShapeDtypeStruct((N, 2, Cp), jnp.float32)),
        grid_spec=pltpu.PrefetchScalarGridSpec(
            num_scalar_prefetch=0,
            grid=(N,),
            in_specs=[
                pl.BlockSpec((1, H + 2 * P, W + 2 * P, Cin), lambda n: (n, 0, 0, 0)),
                pl.BlockSpec((KKC, Cp), lambda n: (0, 0)),
                pl.BlockSpec((1, Cp), lambda n: (0, 0)),
            ],
            out_specs=[
                pl.BlockSpec((1, HW, Cp), lambda n: (n, 0, 0)),
                pl.BlockSpec((1, 2, Cp), lambda n: (n, 0, 0)),
            ],
            scratch_shapes=[pltpu.VMEM((HW, KKC), jnp.bfloat16)],
        ),
        compiler_params=pltpu.CompilerParams(
            dimension_semantics=("parallel",),
            vmem_limit_bytes=vmem_bytes),
        cost_estimate=pl.CostEstimate(
            flops=2 * N * HW * KKC * Cp,
            transcendentals=0,
            bytes_accessed=int(x_pad.size * 2 + w2.size * 2
                               + N * HW * Cp * 4 + N * 2 * Cp * 4)),
    )(x_pad, w2, cb)

    # ---- BN1 batch statistics from the kernel partial sums (no extra HBM pass) ----
    cnt = N * HW
    total = jnp.sum(stats, axis=0)                    # (2, Cp)
    mean1 = total[0, :Cout] / cnt
    var1 = jnp.maximum(total[1, :Cout] / cnt - mean1 * mean1, 0.0)   # biased variance
    inv1 = gamma1 / jnp.sqrt(var1 + BN_EPS)
    s1 = jnp.pad(inv1, (0, Cp - Cout)).reshape(1, Cp)
    b1 = jnp.pad(beta1 - mean1 * inv1, (0, Cp - Cout)).reshape(1, Cp)

    # ---- BN1 affine + leaky_relu kernel (in place over conv_out) ---------------
    y = pl.pallas_call(
        _bn1_act_kernel,
        out_shape=jax.ShapeDtypeStruct((N, HW, Cp), jnp.float32),
        grid_spec=pltpu.PrefetchScalarGridSpec(
            num_scalar_prefetch=0,
            grid=(N,),
            in_specs=[
                pl.BlockSpec((1, HW, Cp), lambda n: (n, 0, 0)),
                pl.BlockSpec((1, Cp), lambda n: (0, 0)),
                pl.BlockSpec((1, Cp), lambda n: (0, 0)),
            ],
            out_specs=pl.BlockSpec((1, HW, Cp), lambda n: (n, 0, 0)),
        ),
        compiler_params=pltpu.CompilerParams(dimension_semantics=("parallel",)),
        cost_estimate=pl.CostEstimate(
            flops=4 * N * HW * Cp,
            transcendentals=0,
            bytes_accessed=2 * N * HW * Cp * 4),
        input_output_aliases={0: 0},
    )(conv_out, s1, b1)

    y = y[:, :, :Cout].reshape(N, H, W, Cout)
    return jnp.transpose(y, (0, 3, 1, 2))             # back to NCHW


def inconv_reference(x_nchw, params):
    """Pure-JAX reference (XLA conv). The conv inputs are quantized to bf16 exactly
    like the kernel (f32 accumulation), so the comparison tolerance can stay tight."""
    gamma0, beta0 = params["gamma0"], params["beta0"]
    w_hwio, conv_b = params["w_hwio"], params["conv_b"]
    gamma1, beta1 = params["gamma1"], params["beta1"]

    x = jnp.transpose(x_nchw, (0, 2, 3, 1)).astype(jnp.float32)
    mean0 = jnp.mean(x, axis=(0, 1, 2))
    var0 = jnp.var(x, axis=(0, 1, 2))
    inv0 = gamma0 / jnp.sqrt(var0 + BN_EPS)
    xn = (x * inv0 + (beta0 - mean0 * inv0)).astype(jnp.bfloat16)
    conv = lax.conv_general_dilated(
        xn, w_hwio.astype(jnp.bfloat16), window_strides=(1, 1),
        padding=((P, P), (P, P)), dimension_numbers=("NHWC", "HWIO", "NHWC"),
        preferred_element_type=jnp.float32) + conv_b
    mean1 = jnp.mean(conv, axis=(0, 1, 2))
    var1 = jnp.var(conv, axis=(0, 1, 2))
    inv1 = gamma1 / jnp.sqrt(var1 + BN_EPS)
    yy = conv * inv1 + (beta1 - mean1 * inv1)
    yy = jnp.maximum(yy, LEAKY_SLOPE * yy)
    return jnp.transpose(yy, (0, 3, 1, 2))


if __name__ == "__main__":
    N, Cin, H, W, Cout = 2, 4, 16, 16, 8

    key = jax.random.PRNGKey(0)
    kx, k0, k1, kw, kb, k2, k3 = jax.random.split(key, 7)
    x = jax.random.normal(kx, (N, Cin, H, W), jnp.float32)
    params = {
        "gamma0": 1.0 + 0.1 * jax.random.normal(k0, (Cin,), jnp.float32),
        "beta0": 0.1 * jax.random.normal(k1, (Cin,), jnp.float32),
        "w_hwio": 0.1 * jax.random.normal(kw, (K, K, Cin, Cout), jnp.float32),
        "conv_b": 0.1 * jax.random.normal(kb, (Cout,), jnp.float32),
        "gamma1": 1.0 + 0.1 * jax.random.normal(k2, (Cout,), jnp.float32),
        "beta1": 0.1 * jax.random.normal(k3, (Cout,), jnp.float32),
    }

    fwd = jax.jit(inconv_forward)
    out = jax.block_until_ready(fwd(x, params))
    ref = jax.block_until_ready(inconv_reference(x, params))

    assert out.shape == (N, Cout, H, W), out.shape
    assert jnp.allclose(out, ref, atol=2e-3, rtol=2e-3), float(
        jnp.max(jnp.abs(out - ref)))
    print("KERNEL_OK")
</pallas_src>

<mosaic_0001>
module attributes {stable_mosaic.version = 11 : i64} {
  func.func @_bn1_act_kernel(%arg0: i32, %arg1: memref<1x256x128xf32, #tpu.memory_space<vmem>>, %arg2: memref<1x128xf32, #tpu.memory_space<vmem>>, %arg3: memref<1x128xf32, #tpu.memory_space<vmem>>, %arg4: memref<1x256x128xf32, #tpu.memory_space<vmem>>) attributes {dimension_semantics = [#tpu.dimension_semantics<parallel>], iteration_bounds = array<i64: 2>, scalar_prefetch = 0 : i64, scratch_operands = 0 : i64, tpu.core_type = #tpu.core_type<tc>, window_params = [{transform_indices = @transform_0, window_bounds = array<i64: 1, 256, 128>}, {pipeline_mode = #tpu.pipeline_mode<synchronous>, transform_indices = @transform_1, window_bounds = array<i64: 1, 128>}, {pipeline_mode = #tpu.pipeline_mode<synchronous>, transform_indices = @transform_2, window_bounds = array<i64: 1, 128>}, {transform_indices = @transform_3, window_bounds = array<i64: 1, 256, 128>}]} {
    %c0 = arith.constant 0 : index
    %c0_0 = arith.constant 0 : index
    %c0_1 = arith.constant 0 : index
    %0 = vector.load %arg1[%c0, %c0_0, %c0_1] : memref<1x256x128xf32, #tpu.memory_space<vmem>>, vector<1x256x128xf32>
    %1 = vector.shape_cast %0 : vector<1x256x128xf32> to vector<256x128xf32>
    %c0_2 = arith.constant 0 : index
    %c0_3 = arith.constant 0 : index
    %2 = vector.load %arg2[%c0_2, %c0_3] : memref<1x128xf32, #tpu.memory_space<vmem>>, vector<1x128xf32>
    %3 = vector.broadcast %2 : vector<1x128xf32> to vector<256x128xf32>
    %4 = arith.mulf %1, %3 : vector<256x128xf32>
    %c0_4 = arith.constant 0 : index
    %c0_5 = arith.constant 0 : index
    %5 = vector.load %arg3[%c0_4, %c0_5] : memref<1x128xf32, #tpu.memory_space<vmem>>, vector<1x128xf32>
    %6 = vector.broadcast %5 : vector<1x128xf32> to vector<256x128xf32>
    %7 = arith.addf %4, %6 : vector<256x128xf32>
    %cst = arith.constant 0.00999999977 : f32
    %8 = vector.broadcast %cst : f32 to vector<256x128xf32>
    %9 = arith.mulf %8, %7 : vector<256x128xf32>
    %10 = arith.maximumf %7, %9 : vector<256x128xf32>
    %c0_6 = arith.constant 0 : index
    %c0_7 = arith.constant 0 : index
    %c0_8 = arith.constant 0 : index
    %11 = vector.load %arg4[%c0_6, %c0_7, %c0_8] : memref<1x256x128xf32, #tpu.memory_space<vmem>>, vector<1x256x128xf32>
    %12 = vector.shape_cast %11 : vector<1x256x128xf32> to vector<256x128xf32>
    %13 = vector.shape_cast %10 : vector<256x128xf32> to vector<1x256x128xf32>
    tpu.vector_store %arg4[%c0_6, %c0_7, %c0_8], %13 {strides = array<i32>} : memref<1x256x128xf32, #tpu.memory_space<vmem>>, vector<1x256x128xf32>,
    return
  }
  func.func @transform_0(%arg0: i32) -> (i32, i32, i32) {
    %c0_i32 = arith.constant 0 : i32
    %c0_i32_0 = arith.constant 0 : i32
    %c0_i32_1 = arith.constant 0 : i32
    return %arg0, %c0_i32, %c0_i32_0 : i32, i32, i32
  }
  func.func @transform_1(%arg0: i32) -> (i32, i32) {
    %c0_i32 = arith.constant 0 : i32
    %c0_i32_0 = arith.constant 0 : i32
    %c0_i32_1 = arith.constant 0 : i32
    return %c0_i32, %c0_i32_0 : i32, i32
  }
  func.func @transform_2(%arg0: i32) -> (i32, i32) {
    %c0_i32 = arith.constant 0 : i32
    %c0_i32_0 = arith.constant 0 : i32
    %c0_i32_1 = arith.constant 0 : i32
    return %c0_i32, %c0_i32_0 : i32, i32
  }
  func.func @transform_3(%arg0: i32) -> (i32, i32, i32) {
    %c0_i32 = arith.constant 0 : i32
    %c0_i32_0 = arith.constant 0 : i32
    %c0_i32_1 = arith.constant 0 : i32
    return %arg0, %c0_i32, %c0_i32_0 : i32, i32, i32
  }
}

module attributes {stable_mosaic.version = 11 : i64} {
  func.func @_conv_stats_kernel(%arg0: i32, %arg1: memref<1x18x18x4xbf16, #tpu.memory_space<vmem>>, %arg2: memref<36x128xbf16, #tpu.memory_space<vmem>>, %arg3: memref<1x128xf32, #tpu.memory_space<vmem>>, %arg4: memref<1x256x128xf32, #tpu.memory_space<vmem>>, %arg5: memref<1x2x128xf32, #tpu.memory_space<vmem>>, %arg6: memref<256x36xbf16, #tpu.memory_space<vmem>>) attributes {dimension_semantics = [#tpu.dimension_semantics<parallel>], iteration_bounds = array<i64: 2>, scalar_prefetch = 0 : i64, scratch_operands = 1 : i64, tpu.core_type = #tpu.core_type<tc>, window_params = [{transform_indices = @transform_0, window_bounds = array<i64: 1, 18, 18, 4>}, {pipeline_mode = #tpu.pipeline_mode<synchronous>, transform_indices = @transform_1, window_bounds = array<i64: 36, 128>}, {pipeline_mode = #tpu.pipeline_mode<synchronous>, transform_indices = @transform_2, window_bounds = array<i64: 1, 128>}, {transform_indices = @transform_3, window_bounds = array<i64: 1, 256, 128>}, {transform_indices = @transform_4, window_bounds = array<i64: 1, 2, 128>}]} {
    %c0 = arith.constant 0 : index
    %c0_0 = arith.constant 0 : index
    %c0_1 = arith.constant 0 : index
    %c0_2 = arith.constant 0 : index
    %0 = vector.load %arg1[%c0, %c0_0, %c0_1, %c0_2] : memref<1x18x18x4xbf16, #tpu.memory_space<vmem>>, vector<1x18x18x4xbf16>
    %1 = vector.shape_cast %0 : vector<1x18x18x4xbf16> to vector<18x18x4xbf16>
    %2 = arith.extf %1 : vector<18x18x4xbf16> to vector<18x18x4xf32>
    %3 = vector.extract_strided_slice %2 {offsets = [0, 0, 0], sizes = [16, 16, 4], strides = [1, 1, 1]} : vector<18x18x4xf32> to vector<16x16x4xf32>
    %4 = vector.shape_cast %3 : vector<16x16x4xf32> to vector<256x4xf32>
    %5 = arith.truncf %4 : vector<256x4xf32> to vector<256x4xbf16>
    %c0_3 = arith.constant 0 : index
    %c0_4 = arith.constant 0 : index
    %6 = vector.load %arg6[%c0_3, %c0_4] : memref<256x36xbf16, #tpu.memory_space<vmem>>, vector<256x4xbf16>
    tpu.vector_store %arg6[%c0_3, %c0_4], %5 {strides = array<i32>} : memref<256x36xbf16, #tpu.memory_space<vmem>>, vector<256x4xbf16>,
    %7 = vector.extract_strided_slice %2 {offsets = [0, 1, 0], sizes = [16, 16, 4], strides = [1, 1, 1]} : vector<18x18x4xf32> to vector<16x16x4xf32>
    %8 = vector.shape_cast %7 : vector<16x16x4xf32> to vector<256x4xf32>
    %9 = arith.truncf %8 : vector<256x4xf32> to vector<256x4xbf16>
    %c0_5 = arith.constant 0 : index
    %c4 = arith.constant 4 : index
    %10 = vector.load %arg6[%c0_5, %c4] : memref<256x36xbf16, #tpu.memory_space<vmem>>, vector<256x4xbf16>
    tpu.vector_store %arg6[%c0_5, %c4], %9 {strides = array<i32>} : memref<256x36xbf16, #tpu.memory_space<vmem>>, vector<256x4xbf16>,
    %11 = vector.extract_strided_slice %2 {offsets = [0, 2, 0], sizes = [16, 16, 4], strides = [1, 1, 1]} : vector<18x18x4xf32> to vector<16x16x4xf32>
    %12 = vector.shape_cast %11 : vector<16x16x4xf32> to vector<256x4xf32>
    %13 = arith.truncf %12 : vector<256x4xf32> to vector<256x4xbf16>
    %c0_6 = arith.constant 0 : index
    %c8 = arith.constant 8 : index
    %14 = vector.load %arg6[%c0_6, %c8] : memref<256x36xbf16, #tpu.memory_space<vmem>>, vector<256x4xbf16>
    tpu.vector_store %arg6[%c0_6, %c8], %13 {strides = array<i32>} : memref<256x36xbf16, #tpu.memory_space<vmem>>, vector<256x4xbf16>,
    %15 = vector.extract_strided_slice %2 {offsets = [1, 0, 0], sizes = [16, 16, 4], strides = [1, 1, 1]} : vector<18x18x4xf32> to vector<16x16x4xf32>
    %16 = vector.shape_cast %15 : vector<16x16x4xf32> to vector<256x4xf32>
    %17 = arith.truncf %16 : vector<256x4xf32> to vector<256x4xbf16>
    %c0_7 = arith.constant 0 : index
    %c12 = arith.constant 12 : index
    %18 = vector.load %arg6[%c0_7, %c12] : memref<256x36xbf16, #tpu.memory_space<vmem>>, vector<256x4xbf16>
    tpu.vector_store %arg6[%c0_7, %c12], %17 {strides = array<i32>} : memref<256x36xbf16, #tpu.memory_space<vmem>>, vector<256x4xbf16>,
    %19 = vector.extract_strided_slice %2 {offsets = [1, 1, 0], sizes = [16, 16, 4], strides = [1, 1, 1]} : vector<18x18x4xf32> to vector<16x16x4xf32>
    %20 = vector.shape_cast %19 : vector<16x16x4xf32> to vector<256x4xf32>
    %21 = arith.truncf %20 : vector<256x4xf32> to vector<256x4xbf16>
    %c0_8 = arith.constant 0 : index
    %c16 = arith.constant 16 : index
    %22 = vector.load %arg6[%c0_8, %c16] : memref<256x36xbf16, #tpu.memory_space<vmem>>, vector<256x4xbf16>
    tpu.vector_store %arg6[%c0_8, %c16], %21 {strides = array<i32>} : memref<256x36xbf16, #tpu.memory_space<vmem>>, vector<256x4xbf16>,
    %23 = vector.extract_strided_slice %2 {offsets = [1, 2, 0], sizes = [16, 16, 4], strides = [1, 1, 1]} : vector<18x18x4xf32> to vector<16x16x4xf32>
    %24 = vector.shape_cast %23 : vector<16x16x4xf32> to vector<256x4xf32>
    %25 = arith.truncf %24 : vector<256x4xf32> to vector<256x4xbf16>
    %c0_9 = arith.constant 0 : index
    %c20 = arith.constant 20 : index
    %26 = vector.load %arg6[%c0_9, %c20] : memref<256x36xbf16, #tpu.memory_space<vmem>>, vector<256x4xbf16>
    tpu.vector_store %arg6[%c0_9, %c20], %25 {strides = array<i32>} : memref<256x36xbf16, #tpu.memory_space<vmem>>, vector<256x4xbf16>,
    %27 = vector.extract_strided_slice %2 {offsets = [2, 0, 0], sizes = [16, 16, 4], strides = [1, 1, 1]} : vector<18x18x4xf32> to vector<16x16x4xf32>
    %28 = vector.shape_cast %27 : vector<16x16x4xf32> to vector<256x4xf32>
    %29 = arith.truncf %28 : vector<256x4xf32> to vector<256x4xbf16>
    %c0_10 = arith.constant 0 : index
    %c24 = arith.constant 24 : index
    %30 = vector.load %arg6[%c0_10, %c24] : memref<256x36xbf16, #tpu.memory_space<vmem>>, vector<256x4xbf16>
    tpu.vector_store %arg6[%c0_10, %c24], %29 {strides = array<i32>} : memref<256x36xbf16, #tpu.memory_space<vmem>>, vector<256x4xbf16>,
    %31 = vector.extract_strided_slice %2 {offsets = [2, 1, 0], sizes = [16, 16, 4], strides = [1, 1, 1]} : vector<18x18x4xf32> to vector<16x16x4xf32>
    %32 = vector.shape_cast %31 : vector<16x16x4xf32> to vector<256x4xf32>
    %33 = arith.truncf %32 : vector<256x4xf32> to vector<256x4xbf16>
    %c0_11 = arith.constant 0 : index
    %c28 = arith.constant 28 : index
    %34 = vector.load %arg6[%c0_11, %c28] : memref<256x36xbf16, #tpu.memory_space<vmem>>, vector<256x4xbf16>
    tpu.vector_store %arg6[%c0_11, %c28], %33 {strides = array<i32>} : memref<256x36xbf16, #tpu.memory_space<vmem>>, vector<256x4xbf16>,
    %35 = vector.extract_strided_slice %2 {offsets = [2, 2, 0], sizes = [16, 16, 4], strides = [1, 1, 1]} : vector<18x18x4xf32> to vector<16x16x4xf32>
    %36 = vector.shape_cast %35 : vector<16x16x4xf32> to vector<256x4xf32>
    %37 = arith.truncf %36 : vector<256x4xf32> to vector<256x4xbf16>
    %c0_12 = arith.constant 0 : index
    %c32 = arith.constant 32 : index
    %38 = vector.load %arg6[%c0_12, %c32] : memref<256x36xbf16, #tpu.memory_space<vmem>>, vector<256x4xbf16>
    tpu.vector_store %arg6[%c0_12, %c32], %37 {strides = array<i32>} : memref<256x36xbf16, #tpu.memory_space<vmem>>, vector<256x4xbf16>,
    %c0_13 = arith.constant 0 : index
    %c0_14 = arith.constant 0 : index
    %39 = vector.load %arg6[%c0_13, %c0_14] : memref<256x36xbf16, #tpu.memory_space<vmem>>, vector<256x36xbf16>
    %c0_15 = arith.constant 0 : index
    %c0_16 = arith.constant 0 : index
    %40 = vector.load %arg2[%c0_15, %c0_16] : memref<36x128xbf16, #tpu.memory_space<vmem>>, vector<36x128xbf16>
    %cst = arith.constant dense<0.000000e+00> : vector<256x128xf32>
    %41 = tpu.matmul %39, %40, %cst {dimension_numbers = #tpu.dot_dimension_numbers<[1], [0], [0], [1], [0, 0, 1, 1], [], []>} : vector<256x36xbf16>, vector<36x128xbf16>, vector<256x128xf32> -> vector<256x128xf32>
    %c0_17 = arith.constant 0 : index
    %c0_18 = arith.constant 0 : index
    %42 = vector.load %arg3[%c0_17, %c0_18] : memref<1x128xf32, #tpu.memory_space<vmem>>, vector<1x128xf32>
    %43 = vector.broadcast %42 : vector<1x128xf32> to vector<256x128xf32>
    %44 = arith.addf %41, %43 : vector<256x128xf32>
    %c0_19 = arith.constant 0 : index
    %c0_20 = arith.constant 0 : index
    %c0_21 = arith.constant 0 : index
    %45 = vector.load %arg4[%c0_19, %c0_20, %c0_21] : memref<1x256x128xf32, #tpu.memory_space<vmem>>, vector<1x256x128xf32>
    %46 = vector.shape_cast %45 : vector<1x256x128xf32> to vector<256x128xf32>
    %47 = vector.shape_cast %44 : vector<256x128xf32> to vector<1x256x128xf32>
    tpu.vector_store %arg4[%c0_19, %c0_20, %c0_21], %47 {strides = array<i32>} : memref<1x256x128xf32, #tpu.memory_space<vmem>>, vector<1x256x128xf32>,
    %cst_22 = arith.constant dense<0.000000e+00> : vector<128xf32>
    %48 = vector.multi_reduction <add>, %44, %cst_22 [0] : vector<256x128xf32> to vector<128xf32>
    %49 = vector.shape_cast %48 : vector<128xf32> to vector<1x128xf32>
    %c0_23 = arith.constant 0 : index
    %c0_24 = arith.constant 0 : index
    %c0_25 = arith.constant 0 : index
    %50 = vector.load %arg5[%c0_23, %c0_24, %c0_25] : memref<1x2x128xf32, #tpu.memory_space<vmem>>, vector<1x1x128xf32>
    %51 = vector.shape_cast %50 : vector<1x1x128xf32> to vector<1x128xf32>
    %52 = vector.shape_cast %49 : vector<1x128xf32> to vector<1x1x128xf32>
    tpu.vector_store %arg5[%c0_23, %c0_24, %c0_25], %52 {strides = array<i32>} : memref<1x2x128xf32, #tpu.memory_space<vmem>>, vector<1x1x128xf32>,
    %53 = arith.mulf %44, %44 : vector<256x128xf32>
    %cst_26 = arith.constant dense<0.000000e+00> : vector<128xf32>
    %54 = vector.multi_reduction <add>, %53, %cst_26 [0] : vector<256x128xf32> to vector<128xf32>
    %55 = vector.shape_cast %54 : vector<128xf32> to vector<1x128xf32>
    %c0_27 = arith.constant 0 : index
    %c1 = arith.constant 1 : index
    %c0_28 = arith.constant 0 : index
    %56 = vector.load %arg5[%c0_27, %c1, %c0_28] : memref<1x2x128xf32, #tpu.memory_space<vmem>>, vector<1x1x128xf32>
    %57 = vector.shape_cast %56 : vector<1x1x128xf32> to vector<1x128xf32>
    %58 = vector.shape_cast %55 : vector<1x128xf32> to vector<1x1x128xf32>
    tpu.vector_store %arg5[%c0_27, %c1, %c0_28], %58 {strides = array<i32>} : memref<1x2x128xf32, #tpu.memory_space<vmem>>, vector<1x1x128xf32>,
    return
  }
  func.func @transform_0(%arg0: i32) -> (i32, i32, i32, i32) {
    %c0_i32 = arith.constant 0 : i32
    %c0_i32_0 = arith.constant 0 : i32
    %c0_i32_1 = arith.constant 0 : i32
    %c0_i32_2 = arith.constant 0 : i32
    return %arg0, %c0_i32, %c0_i32_0, %c0_i32_1 : i32, i32, i32, i32
  }
  func.func @transform_1(%arg0: i32) -> (i32, i32) {
    %c0_i32 = arith.constant 0 : i32
    %c0_i32_0 = arith.constant 0 : i32
    %c0_i32_1 = arith.constant 0 : i32
    return %c0_i32, %c0_i32_0 : i32, i32
  }
  func.func @transform_2(%arg0: i32) -> (i32, i32) {
    %c0_i32 = arith.constant 0 : i32
    %c0_i32_0 = arith.constant 0 : i32
    %c0_i32_1 = arith.constant 0 : i32
    return %c0_i32, %c0_i32_0 : i32, i32
  }
  func.func @transform_3(%arg0: i32) -> (i32, i32, i32) {
    %c0_i32 = arith.constant 0 : i32
    %c0_i32_0 = arith.constant 0 : i32
    %c0_i32_1 = arith.constant 0 : i32
    return %arg0, %c0_i32, %c0_i32_0 : i32, i32, i32
  }
  func.func @transform_4(%arg0: i32) -> (i32, i32, i32) {
    %c0_i32 = arith.constant 0 : i32
    %c0_i32_0 = arith.constant 0 : i32
    %c0_i32_1 = arith.constant 0 : i32
    return %arg0, %c0_i32, %c0_i32_0 : i32, i32, i32
  }
}

</mosaic_0001>

<bundles_post_ra>
// kernel: inconv_forward.3
= control target key start
LH: loop header
LB: loop body
LE: loop exit
PB: predicated region body
PF: predicated region fallthrough
CT: control target
= control target key end

     0   :  { %s483_s12 = smov 0   ;;  %s689_s0 = inlined_call_operand.vmem [shape: f32[2,256,128], index: 0, kind: input, shape index: {}, may-alias: {0,3}]   ;;  %s690_s1 = inlined_call_operand.vmem [shape: f32[1,128], index: 1, kind: input, shape index: {}]   ;;  %s691_s2 = inlined_call_operand.vmem [shape: f32[1,128], index: 2, kind: input, shape index: {}]   ;;  %s692_s3 = inlined_call_operand.vmem [shape: f32[2,256,128], index: 3, kind: output, shape index: {}, may-alias: {0,3}]  }
   0x1 LB: > { %s432_s13 = sadd.s32 4294967295, %s461_s12   ;;  %p436_p0 = scmp.ge.s32.totalorder %s461_s12, 1  ;;  %s461_s12 = sphi %s483_s12, %s13_s12  }
   0x2   : > { %p137_p1 = scmp.lt.s32.totalorder %s461_s12, 3 }
   0x4   : > { %p138_p2 = pnand %p436_p0, %p137_p1 }
   0x5   : > { %p161_p3 = scmp.lt.s32.totalorder (!%p138_p2), %s432_s13, 1  ;;  %v497_v0 = vld [vmem:[%s690_s1] ss:$0 sm:$0xff] (!%p138_p2) }
   0x6   : > { %141 = sbr.rel (%p138_p2) target bundleno = 54 (0x36), region = 32  ;;  %v509_v1 = vld [vmem:[%s691_s2] ss:$0 sm:$0xff] (!%p138_p2) }
   0xd   : > { %s694_s13 = smov (!%p161_p3, %s432_s13), 1 }
   0xe   : > { %s445_s14 = sshll.u32 %s694_s13, 8 }
   0xf   : > { %s504_s19 = scalar_lea.vmem %s689_s0, %s445_s14  ;;  %s555_s24 = scalar_lea.vmem %s692_s3, %s445_s14 }
  0x10   : > { %v171_v2 = vld [vmem:[%s504_s19] sm:$0xff]  ;;  %v172_v3 = vld [vmem:[%s504_s19 + $0x8] sm:$0xff]  ;;  %v173_v4 = vld [vmem:[%s504_s19 + $0x10] sm:$0xff] }
  0x11   : > { %v174_v5 = vld [vmem:[%s504_s19 + $0x18] sm:$0xff]  ;;  %v175_v6 = vld [vmem:[%s504_s19 + $0x20] sm:$0xff]  ;;  %v176_v7 = vld [vmem:[%s504_s19 + $0x28] sm:$0xff]  ;;  %v210_v8 = vmul.f32 %v497_v0, %v171_v2  ;;  %v211_v9 = vmul.f32 %v497_v0, %v172_v3  ;;  %v212_v10 = vmul.f32 %v497_v0, %v173_v4 }
  0x12   : > { %v177_v11 = vld [vmem:[%s504_s19 + $0x30] sm:$0xff]  ;;  %v178_v12 = vld [vmem:[%s504_s19 + $0x38] sm:$0xff]  ;;  %v179_v13 = vld [vmem:[%s504_s19 + $0x40] sm:$0xff]  ;;  %v213_v14 = vmul.f32 %v497_v0, %v174_v5  ;;  %v214_v15 = vmul.f32 %v497_v0, %v175_v6  ;;  %v215_v16 = vmul.f32 %v497_v0, %v176_v7 }
  0x13   : > { %v180_v17 = vld [vmem:[%s504_s19 + $0x48] sm:$0xff]  ;;  %v181_v18 = vld [vmem:[%s504_s19 + $0x50] sm:$0xff]  ;;  %v182_v19 = vld [vmem:[%s504_s19 + $0x58] sm:$0xff]  ;;  %v249_v20 = vadd.f32 %v509_v1, %v210_v8  ;;  %v250_v21 = vadd.f32 %v509_v1, %v211_v9  ;;  %v251_v22 = vadd.f32 %v509_v1, %v212_v10  ;;  %v216_v23 = vmul.f32 %v497_v0, %v177_v11 }
  0x14   : > { %v252_v24 = vadd.f32 %v509_v1, %v213_v14  ;;  %v253_v25 = vadd.f32 %v509_v1, %v214_v15  ;;  %v536_v26 = vadd.f32 %v509_v1, %v215_v16  ;;  %v217_v27 = vmul.f32 %v497_v0, %v178_v12  ;;  %v183_v32 = vld [vmem:[%s504_s19 + $0x60] sm:$0xff]  ;;  %v184_v33 = vld [vmem:[%s504_s19 + $0x68] sm:$0xff]  ;;  %v185_v38 = vld [vmem:[%s504_s19 + $0x70] sm:$0xff] }
  0x15   : > { %v281_v28 = vmul.f32 0.01, %v249_v20  ;;  %v255_v29 = vadd.f32 %v509_v1, %v216_v23  ;;  %v218_v30 = vmul.f32 %v497_v0, %v179_v13  ;;  %v219_v31 = vmul.f32 %v497_v0, %v180_v17  ;;  %v186_v43 = vld [vmem:[%s504_s19 + $0x78] sm:$0xff]  ;;  %v187_v44 = vld [vmem:[%s504_s19 + $0x80] sm:$0xff]  ;;  %v188_v45 = vld [vmem:[%s504_s19 + $0x88] sm:$0xff] }
  0x16   : > { %v282_v34 = vmul.f32 0.01, %v250_v21  ;;  %v256_v35 = vadd.f32 %v509_v1, %v217_v27  ;;  %v220_v36 = vmul.f32 %v497_v0, %v181_v18  ;;  %v221_v37 = vmul.f32 %v497_v0, %v182_v19  ;;  %v189_v46 = vld [vmem:[%s504_s19 + $0x90] sm:$0xff]  ;;  %v190_v47 = vld [vmem:[%s504_s19 + $0x98] sm:$0xff]  ;;  %v563_v48 = vld [vmem:[%s504_s19 + $0xa0] sm:$0xff] }
  0x17   : > { %v313_v39 = vmax.f32 %v249_v20, %v281_v28  ;;  %v283_v40 = vmul.f32 0.01, %v251_v22  ;;  %v257_v41 = vadd.f32 %v509_v1, %v218_v30  ;;  %v258_v42 = vadd.f32 %v509_v1, %v219_v31  ;;  %v566_v49 = vld [vmem:[%s504_s19 + $0xa8] sm:$0xff]  ;;  %v569_v50 = vld [vmem:[%s504_s19 + $0xb0] sm:$0xff]  ;;  %v572_v51 = vld [vmem:[%s504_s19 + $0xb8] sm:$0xff] }
  0x18   : > { %v575_v52 = vld [vmem:[%s504_s19 + $0xc0] sm:$0xff]  ;;  %v578_v53 = vld [vmem:[%s504_s19 + $0xc8] sm:$0xff]  ;;  %v581_v54 = vld [vmem:[%s504_s19 + $0xd0] sm:$0xff]  ;;  %v314_v55 = vmax.f32 %v250_v21, %v282_v34  ;;  %v284_v56 = vmul.f32 0.01, %v252_v24  ;;  %v259_v57 = vadd.f32 %v509_v1, %v220_v36  ;;  %v260_v58 = vadd.f32 %v509_v1, %v221_v37 }
  0x19   : > { %v586_v59 = vld [vmem:[%s504_s19 + $0xd8] sm:$0xff]  ;;  %v589_v60 = vld [vmem:[%s504_s19 + $0xe0] sm:$0xff]  ;;  %v592_v61 = vld [vmem:[%s504_s19 + $0xe8] sm:$0xff]  ;;  %v315_v62 = vmax.f32 %v251_v22, %v283_v40  ;;  %v285_v63 = vmul.f32 0.01, %v253_v25  ;;  %v222_v2 = vmul.f32 %v497_v0, %v183_v32  ;;  %v223_v3 = vmul.f32 %v497_v0, %v184_v33 }
  0x1a   : > { %v597_v4 = vld [vmem:[%s504_s19 + $0xf0] sm:$0xff]  ;;  %v600_v5 = vld [vmem:[%s504_s19 + $0xf8] sm:$0xff]  ;;  %v316_v6 = vmax.f32 %v252_v24, %v284_v56  ;;  %v286_v7 = vmul.f32 0.01, %v536_v26  ;;  %v287_v8 = vmul.f32 0.01, %v255_v29  ;;  %v224_v9 = vmul.f32 %v497_v0, %v185_v38 }
  0x1b   : > { %345 = vst [vmem:[%s555_s24] sm:$0xff] %v313_v39  ;;  %346 = vst [vmem:[%s555_s24 + $0x8] sm:$0xff] %v314_v55  ;;  %v317_v10 = vmax.f32 %v253_v25, %v285_v63  ;;  %v288_v11 = vmul.f32 0.01, %v256_v35  ;;  %v289_v12 = vmul.f32 0.01, %v257_v41  ;;  %v261_v21 = vadd.f32 %v509_v1, %v222_v2 }
  0x1c   : > { %347 = vst [vmem:[%s555_s24 + $0x10] sm:$0xff] %v315_v62  ;;  %v290_v13 = vmul.f32 0.01, %v258_v42  ;;  %348 = vst [vmem:[%s555_s24 + $0x18] sm:$0xff] %v316_v6  ;;  %v318_v14 = vmax.f32 %v536_v26, %v286_v7  ;;  %v319_v15 = vmax.f32 %v255_v29, %v287_v8  ;;  %v291_v16 = vmul.f32 0.01, %v259_v57 }
  0x1d   : > { %v292_v17 = vmul.f32 0.01, %v260_v58  ;;  %349 = vst [vmem:[%s555_s24 + $0x20] sm:$0xff] %v317_v10  ;;  %v320_v18 = vmax.f32 %v256_v35, %v288_v11  ;;  %v321_v19 = vmax.f32 %v257_v41, %v289_v12  ;;  %v262_v24 = vadd.f32 %v509_v1, %v223_v3 }
  0x1e   : > { %v322_v20 = vmax.f32 %v258_v42, %v290_v13  ;;  %350 = vst [vmem:[%s555_s24 + $0x28] sm:$0xff] %v318_v14  ;;  %351 = vst [vmem:[%s555_s24 + $0x30] sm:$0xff] %v319_v15  ;;  %v323_v22 = vmax.f32 %v259_v57, %v291_v16  ;;  %v263_v25 = vadd.f32 %v509_v1, %v224_v9  ;;  %v293_v26 = vmul.f32 0.01, %v261_v21 }
  0x1f   : > { %v324_v23 = vmax.f32 %v260_v58, %v292_v17  ;;  %352 = vst [vmem:[%s555_s24 + $0x38] sm:$0xff] %v320_v18  ;;  %353 = vst [vmem:[%s555_s24 + $0x40] sm:$0xff] %v321_v19  ;;  %v225_v27 = vmul.f32 %v497_v0, %v186_v43  ;;  %v226_v28 = vmul.f32 %v497_v0, %v187_v44  ;;  %v294_v30 = vmul.f32 0.01, %v262_v24 }
  0x20   : > { %354 = vst [vmem:[%s555_s24 + $0x48] sm:$0xff] %v322_v20  ;;  %v227_v29 = vmul.f32 %v497_v0, %v188_v45  ;;  %355 = vst [vmem:[%s555_s24 + $0x50] sm:$0xff] %v323_v22  ;;  %v295_v31 = vmul.f32 0.01, %v263_v25  ;;  %v228_v32 = vmul.f32 %v497_v0, %v189_v46  ;;  %v229_v33 = vmul.f32 %v497_v0, %v190_v47 }
  0x21   : > { %356 = vst [vmem:[%s555_s24 + $0x58] sm:$0xff] %v324_v23  ;;  %v325_v34 = vmax.f32 %v261_v21, %v293_v26  ;;  %v264_v35 = vadd.f32 %v509_v1, %v225_v27  ;;  %v265_v36 = vadd.f32 %v509_v1, %v226_v28  ;;  %v326_v38 = vmax.f32 %v262_v24, %v294_v30 }
  0x22   : > { %v266_v37 = vadd.f32 %v509_v1, %v227_v29  ;;  %v327_v39 = vmax.f32 %v263_v25, %v295_v31  ;;  %v267_v40 = vadd.f32 %v509_v1, %v228_v32  ;;  %v268_v41 = vadd.f32 %v509_v1, %v229_v33 }
  0x23   : > { %357 = vst [vmem:[%s555_s24 + $0x60] sm:$0xff] %v325_v34  ;;  %v296_v42 = vmul.f32 0.01, %v264_v35  ;;  %v297_v43 = vmul.f32 0.01, %v265_v36  ;;  %v230_v45 = vmul.f32 %v497_v0, %v563_v48  ;;  %358 = vst [vmem:[%s555_s24 + $0x68] sm:$0xff] %v326_v38  ;;  %v231_v55 = vmul.f32 %v497_v0, %v566_v49 }
  0x24   : > { %v298_v44 = vmul.f32 0.01, %v266_v37  ;;  %359 = vst [vmem:[%s555_s24 + $0x70] sm:$0xff] %v327_v39  ;;  %v299_v46 = vmul.f32 0.01, %v267_v40  ;;  %v232_v56 = vmul.f32 %v497_v0, %v569_v50  ;;  %v233_v50 = vmul.f32 %v497_v0, %v572_v51 }
  0x25   : > { %v300_v47 = vmul.f32 0.01, %v268_v41  ;;  %v328_v57 = vmax.f32 %v264_v35, %v296_v42  ;;  %v329_v58 = vmax.f32 %v265_v36, %v297_v43  ;;  %v269_v63 = vadd.f32 %v509_v1, %v230_v45 }
  0x26   : > { %v330_v62 = vmax.f32 %v266_v37, %v298_v44  ;;  %v331_v48 = vmax.f32 %v267_v40, %v299_v46  ;;  %v270_v3 = vadd.f32 %v509_v1, %v231_v55  ;;  %v271_v6 = vadd.f32 %v509_v1, %v232_v56 }
  0x27   : > { %v332_v2 = vmax.f32 %v268_v41, %v300_v47  ;;  %360 = vst [vmem:[%s555_s24 + $0x78] sm:$0xff] %v328_v57  ;;  %361 = vst [vmem:[%s555_s24 + $0x80] sm:$0xff] %v329_v58  ;;  %v301_v49 = vmul.f32 0.01, %v269_v63  ;;  %v234_v7 = vmul.f32 %v497_v0, %v575_v52  ;;  %v235_v8 = vmul.f32 %v497_v0, %v578_v53 }
  0x28   : > { %362 = vst [vmem:[%s555_s24 + $0x88] sm:$0xff] %v330_v62  ;;  %363 = vst [vmem:[%s555_s24 + $0x90] sm:$0xff] %v331_v48  ;;  %v302_v9 = vmul.f32 0.01, %v270_v3  ;;  %v303_v10 = vmul.f32 0.01, %v271_v6  ;;  %v236_v11 = vmul.f32 %v497_v0, %v581_v54  ;;  %v237_v12 = vmul.f32 %v497_v0, %v586_v59 }
  0x29   : > { %364 = vst [vmem:[%s555_s24 + $0x98] sm:$0xff] %v332_v2  ;;  %v333_v51 = vmax.f32 %v269_v63, %v301_v49  ;;  %v272_v13 = vadd.f32 %v509_v1, %v233_v50  ;;  %v273_v52 = vadd.f32 %v509_v1, %v234_v7  ;;  %v274_v14 = vadd.f32 %v509_v1, %v235_v8 }
  0x2a   : > { %v334_v53 = vmax.f32 %v270_v3, %v302_v9  ;;  %v335_v15 = vmax.f32 %v271_v6, %v303_v10  ;;  %v275_v16 = vadd.f32 %v509_v1, %v236_v11  ;;  %v276_v17 = vadd.f32 %v509_v1, %v237_v12 }
  0x2b   : > { %365 = vst [vmem:[%s555_s24 + $0xa0] sm:$0xff] %v333_v51  ;;  %v304_v18 = vmul.f32 0.01, %v272_v13  ;;  %v305_v54 = vmul.f32 0.01, %v273_v52  ;;  %v238_v59 = vmul.f32 %v497_v0, %v589_v60  ;;  %v239_v22 = vmul.f32 %v497_v0, %v592_v61 }
  0x2c   : > { %v306_v19 = vmul.f32 0.01, %v274_v14  ;;  %366 = vst [vmem:[%s555_s24 + $0xa8] sm:$0xff] %v334_v53  ;;  %367 = vst [vmem:[%s555_s24 + $0xb0] sm:$0xff] %v335_v15  ;;  %v307_v20 = vmul.f32 0.01, %v275_v16  ;;  %v240_v23 = vmul.f32 %v497_v0, %v597_v4  ;;  %v241_v4 = vmul.f32 %v497_v0, %v600_v5 }
  0x2d   : > { %v308_v21 = vmul.f32 0.01, %v276_v17  ;;  %v336_v24 = vmax.f32 %v272_v13, %v304_v18  ;;  %v337_v25 = vmax.f32 %v273_v52, %v305_v54  ;;  %v277_v27 = vadd.f32 %v509_v1, %v238_v59 }
  0x2e   : > { %v338_v26 = vmax.f32 %v274_v14, %v306_v19  ;;  %v339_v60 = vmax.f32 %v275_v16, %v307_v20  ;;  %v278_v29 = vadd.f32 %v509_v1, %v239_v22  ;;  %v279_v30 = vadd.f32 %v509_v1, %v240_v23 }
  0x2f   : > { %v340_v28 = vmax.f32 %v276_v17, %v308_v21  ;;  %368 = vst [vmem:[%s555_s24 + $0xb8] sm:$0xff] %v336_v24  ;;  %369 = vst [vmem:[%s555_s24 + $0xc0] sm:$0xff] %v337_v25  ;;  %v309_v61 = vmul.f32 0.01, %v277_v27  ;;  %v280_v34 = vadd.f32 %v509_v1, %v241_v4 }
  0x30   : > { %370 = vst [vmem:[%s555_s24 + $0xc8] sm:$0xff] %v338_v26  ;;  %371 = vst [vmem:[%s555_s24 + $0xd0] sm:$0xff] %v339_v60  ;;  %v310_v31 = vmul.f32 0.01, %v278_v29  ;;  %v311_v32 = vmul.f32 0.01, %v279_v30 }
  0x31   : > { %372 = vst [vmem:[%s555_s24 + $0xd8] sm:$0xff] %v340_v28  ;;  %v341_v33 = vmax.f32 %v277_v27, %v309_v61  ;;  %v312_v37 = vmul.f32 0.01, %v280_v34 }
  0x32   : > { %v342_v35 = vmax.f32 %v278_v29, %v310_v31  ;;  %v343_v36 = vmax.f32 %v279_v30, %v311_v32 }
  0x33   : > { %373 = vst [vmem:[%s555_s24 + $0xe0] sm:$0xff] %v341_v33  ;;  %v344_v38 = vmax.f32 %v280_v34, %v312_v37 }
  0x34   : > { %374 = vst [vmem:[%s555_s24 + $0xe8] sm:$0xff] %v342_v35  ;;  %375 = vst [vmem:[%s555_s24 + $0xf0] sm:$0xff] %v343_v36 }
  0x35   : > { %376 = vst [vmem:[%s555_s24 + $0xf8] sm:$0xff] %v344_v38 }
  0x36 PF: > { %s13_s12 = sadd.s32 1, %s461_s12  }
  0x37   : > { %p10_p4 = scmp.ge.s32.totalorder %s13_s12, 4  }
  0x39   :  { %12 = sbr.rel (!%p10_p4) target bundleno = 1 (0x1), region = 62 }

// kernel: inconv_forward.2
= control target key start
LH: loop header
LB: loop body
LE: loop exit
PB: predicated region body
PF: predicated region fallthrough
CT: control target
= control target key end

     0   :  { %s1964_s15 = smov 0   ;;  %s2596_s0 = inlined_call_operand.vmem [shape: bf16[2,18,18,4], index: 0, kind: input, shape index: {}]   ;;  %s2597_s1 = inlined_call_operand.vmem [shape: bf16[36,128], index: 1, kind: input, shape index: {}]   ;;  %s2598_s2 = inlined_call_operand.vmem [shape: f32[1,128], index: 2, kind: input, shape index: {}]   ;;  %s2599_s3 = inlined_call_operand.vmem [shape: f32[2,256,128], index: 3, kind: output, shape index: {0}]   ;;  %s2600_s4 = inlined_call_operand.vmem [shape: f32[2,2,128], index: 4, kind: output, shape index: {1}]  }
   0x1 LB: > { %s1753_s16 = sadd.s32 4294967295, %s1929_s15   ;;  %p1757_p0 = scmp.ge.s32.totalorder %s1929_s15, 1  ;;  %s1929_s15 = sphi %s1964_s15, %s15_s15  }
   0x2   : > { %p165_p1 = scmp.lt.s32.totalorder %s1929_s15, 3 }
   0x4   : > { %p166_p2 = pnand %p1757_p0, %p165_p1 }
   0x5   : > { %p195_p3 = scmp.lt.s32.totalorder (!%p166_p2), %s1753_s16, 1  ;;  %vm334_vm0 = vcmask (!%p166_p2), 31744   ;;  %s1931_s21 = smov (!%p166_p2), 12   ;;  %vm399_vm1 = vcmask (!%p166_p2), 1046528   ;;  %vm609_vm2 = vcmask (!%p166_p2), 1045504   ;;  %v1895_v62 = vld [vmem:[%s2597_s1] sm:$0xff] (!%p166_p2)  }
   0x6   : > { %169 = sbr.rel (%p166_p2) target bundleno = 637 (0x27d), region = 32  ;;  %s1932_s22 = smov (!%p166_p2), 4   ;;  %1822 = vmatprep.subr.bf16.mxu0 (!%p166_p2), %v1895_v62  ;;  %1860 = vmatprep.subr.bf16.mxu1 (!%p166_p2), %v1895_v62  ;;  %vm1362_vm3 = vcmask (!%p166_p2), 1041408   ;;  %vm592_vm4 = vcmask (!%p166_p2), 64544   ;;  %vm802_vm5 = vcmask (!%p166_p2), 97344   ;;  %vm884_vm6 = vcmask (!%p166_p2), 130144  }
   0x7   : > { %s1933_s23 = smov (!%p166_p2), 8   ;;  %s1934_s24 = smov (!%p166_p2), 16   ;;  %1823 = vmatpush3.bf16.msra.mxu0 (!%p166_p2), %v1895_v62  ;;  %1863 = vmatpush3.bf16.msra.mxu1 (!%p166_p2), %v1895_v62  ;;  %vm961_vm7 = vcmask (!%p166_p2), 162944   ;;  %vm1035_vm8 = vcmask (!%p166_p2), 195744   ;;  %vm1102_vm9 = vcmask (!%p166_p2), 228544   ;;  %vm1179_vm10 = vcmask (!%p166_p2), 261344  }
   0x8   : > { %s1935_s27 = smov (!%p166_p2), 20   ;;  %s1936_s30 = smov (!%p166_p2), 24   ;;  %vm1253_vm11 = vcmask (!%p166_p2), 294144   ;;  %vm1313_vm12 = vcmask (!%p166_p2), 293888  }
   0x9   : > { %s1937_s5 = smov (!%p166_p2), 28   ;;  %s1938_s6 = smov (!%p166_p2), 32  }
   0xd   : > { %s2602_s16 = smov (!%p195_p3, %s1753_s16), 1 }
   0xe   : > { %s1868_s17 = smul.u32 216, %s2602_s16  ;;  %s1802_s9 = sshll.u32 %s2602_s16, 8 }
   0xf   : > { %s2519_s14 = scalar_lea.vmem %s2599_s3, %s1802_s9 }
  0x10   : > { %s1978_s20 = scalar_lea.vmem %s2596_s0, %s1868_s17  ;;  %s1761_s17 = sshll.u32 %s2602_s16, 1 }
  0x11   : > { %v213_v0 = vld [vmem:[%s1978_s20 + $0xc] sm:$0xff]   ;;  %v1982_v1 = vld [vmem:[%s1978_s20 + $0x18] sm:$0xff]   ;;  %v1985_v2 = vld [vmem:[%s1978_s20] sm:$0xff]  }
  0x12   : > { %v268_v3 = vunpack.c.h.bf16 %v213_v0  ;;  %v267_v4 = vunpack.c.l.bf16 %v213_v0  ;;  %v271_v5 = vunpack.c.h.bf16 %v1982_v1  ;;  %v270_v6 = vunpack.c.l.bf16 %v1982_v1  ;;  %v212_v7 = vld [vmem:[%s1978_s20 + $0x8] sm:$0x1]  ;;  %836 = vrot.lane.b32.xlu0 %v213_v0, %s1931_s21  ;;  %336 = vst.msk [vmem:[#allocation2 + $0x8] sm:$0xff] %vm334_vm0, %v213_v0  ;;  %v215_v10 = vld [vmem:[%s1978_s20 + $0x14] sm:$0x1]  ;;  %838 = vrot.lane.b32.xlu1 %v1982_v1, %s1931_s21  ;;  %337 = vst.msk [vmem:[#allocation2 + $0x10] sm:$0xff] %vm334_vm0, %v1982_v1 }
  0x13   : > { %v264_v8 = vunpack.c.l.bf16 %v1985_v2  ;;  %v265_v9 = vunpack.c.h.bf16 %v1985_v2  ;;  %v218_v15 = vld [vmem:[%s1978_s20 + $0x20] sm:$0x1]  ;;  %v266_v16 = vunpack.c.l.bf16 %v212_v7  ;;  %v269_v23 = vunpack.c.l.bf16 %v215_v10  ;;  %v2007_v36 = vld [vmem:[%s1978_s20 + $0x24] sm:$0xff]   ;;  %v2014_v45 = vld [vmem:[%s1978_s20 + $0x30] sm:$0xff]   ;;  %335 = vst.msk [vmem:[#allocation2] sm:$0xff] %vm334_vm0, %v1985_v2 }
  0x14   : > { %v406_v11 = vrot.slane %v268_v3, 1  ;;  %v616_v12 = vrot.slane %v268_v3, 2  ;;  %v405_v13 = vrot.slane %v267_v4, 1  ;;  %v615_v14 = vrot.slane %v267_v4, 2  ;;  %338 = vst.msk [vmem:[#allocation2 + $0x18] sm:$0xff] %vm334_vm0, %v2007_v36  ;;  %v2025_v52 = vld [vmem:[%s1978_s20 + $0x3c] sm:$0xff]  }
  0x15   : > { %v400_v17 = vrot.slane %v264_v8, 1  ;;  %v401_v18 = vrot.slane %v265_v9, 1  ;;  %v610_v19 = vrot.slane %v264_v8, 2  ;;  %v411_v20 = vrot.slane %v271_v5, 1  ;;  %v221_v49 = vld [vmem:[%s1978_s20 + $0x2c] sm:$0x1] }
  0x16   : > { %v410_v21 = vrot.slane %v270_v6, 1  ;;  %v611_v22 = vrot.slane %v265_v9, 2  ;;  %v403_v25 = vrot.slane %v266_v16, 1  ;;  %v613_v26 = vrot.slane %v266_v16, 2  ;;  %339 = vst.msk [vmem:[#allocation2 + $0x20] sm:$0xff] %vm334_vm0, %v2014_v45  ;;  %340 = vst.msk [vmem:[#allocation2 + $0x28] sm:$0xff] %vm334_vm0, %v2025_v52 }
  0x17   : > { %v402_v24 = vsel %vm399_vm1, %v400_v17, %v401_v18  ;;  %v272_v27 = vunpack.c.l.bf16 %v218_v15  ;;  %v407_v29 = vsel %vm399_vm1, %v405_v13, %v406_v11  ;;  %v408_v30 = vrot.slane %v269_v23, 1  ;;  %v2037_v61 = vld [vmem:[%s1978_s20 + $0x48] sm:$0xff]   ;;  %v2045_v63 = vld [vmem:[%s1978_s20 + $0x54] sm:$0xff]   ;;  %v2061_v9 = vld [vmem:[%s1978_s20 + $0x60] sm:$0xff]  }
  0x18   : > { %v612_v28 = vsel %vm609_vm2, %v610_v19, %v611_v22  ;;  %v618_v31 = vrot.slane %v269_v23, 2  ;;  %v404_v32 = vsel %vm399_vm1, %v401_v18, %v403_v25  ;;  %v614_v33 = vsel %vm609_vm2, %v611_v22, %v613_v26  ;;  %v1896_v4 = vld [vmem:[%s2597_s1 + $0x8] sm:$0xff]   ;;  %341 = vst.msk [vmem:[#allocation2 + $0x30] sm:$0xff] %vm334_vm0, %v2037_v61  ;;  %342 = vst.msk [vmem:[#allocation2 + $0x38] sm:$0xff] %vm334_vm0, %v2045_v63  ;;  %v2082_v17 = vld [vmem:[%s1978_s20 + $0x78] sm:$0xff]  }
  0x19   : > { %v617_v34 = vsel %vm609_vm2, %v615_v14, %v616_v12  ;;  %v413_v35 = vrot.slane %v272_v27, 1  ;;  %v512_v37 = vpack.c.bf16 %v404_v32, %v402_v24  ;;  %v722_v38 = vpack.c.bf16 %v614_v33, %v612_v28  ;;  %1824 = vmatprep.subr.bf16.mxu0 %v1896_v4  ;;  %1861 = vmatprep.subr.bf16.mxu1 %v1896_v4  ;;  %v1898_v22 = vld [vmem:[%s2597_s1 + $0x10] ss:$0 sps:$4 sm:$0x33]  }
  0x1a   : > { %v409_v39 = vsel %vm399_vm1, %v406_v11, %v408_v30  ;;  %v619_v40 = vsel %vm609_vm2, %v616_v12, %v618_v31  ;;  %v621_v41 = vrot.slane %v271_v5, 2  ;;  %v620_v42 = vrot.slane %v270_v6, 2  ;;  %1825 = vmatpush3.bf16.msra.mxu0 %v1896_v4  ;;  %1864 = vmatpush3.bf16.msra.mxu1 %v1896_v4  ;;  %v224_v12 = vld [vmem:[%s1978_s20 + $0x38] sm:$0x1]  ;;  %343 = vst.msk [vmem:[#allocation2 + $0x40] sm:$0xff] %vm334_vm0, %v2061_v9  ;;  %v2100_v28 = vld [vmem:[%s1978_s20 + $0x90] sm:$0xff]  }
  0x1b   : > { %544 = vrot.lane.b32.xlu0 %v512_v37, %s1932_s22  ;;  %754 = vrot.lane.b32.xlu1 %v722_v38, %s1933_s23  ;;  %v513_v43 = vpack.c.bf16 %v409_v39, %v407_v29  ;;  %v723_v44 = vpack.c.bf16 %v619_v40, %v617_v34  ;;  %v412_v46 = vsel %vm399_vm1, %v410_v21, %v411_v20  ;;  %v623_v48 = vrot.slane %v272_v27, 2  ;;  %v2087_v21 = vld [vmem:[%s1978_s20 + $0x84] sm:$0xff]   ;;  %v233_v4 = vld [vmem:[%s1978_s20 + $0x5c] sm:$0x1] }
  0x1c   : > { %v414_v47 = vsel %vm399_vm1, %v411_v20, %v413_v35  ;;  %v622_v51 = vsel %vm609_vm2, %v620_v42, %v621_v41  ;;  %v273_v54 = vunpack.c.l.bf16 %v2007_v36  ;;  %v274_v55 = vunpack.c.h.bf16 %v2007_v36  ;;  %345 = vst.msk [vmem:[#allocation2 + $0x50] sm:$0xff] %vm334_vm0, %v2082_v17  ;;  %v227_v27 = vld [vmem:[%s1978_s20 + $0x44] sm:$0x1]  ;;  %1866 = vmatprep.subr.msk.bf16.mxu0 %vm1362_vm3, %v1898_v22  ;;  %1867 = vmatprep.subr.msk.bf16.mxu1 %vm1362_vm3, %v1898_v22  ;;  %v2121_v42 = vld [vmem:[%s1978_s20 + $0x9c] sm:$0xff]  }
  0x1d   : > { %v514_v50 = vpack.c.bf16 %v414_v47, %v412_v46  ;;  %v624_v53 = vsel %vm609_vm2, %v621_v41, %v623_v48  ;;  %v275_v56 = vunpack.c.l.bf16 %v221_v49  ;;  %v276_v14 = vunpack.c.l.bf16 %v2014_v45  ;;  %346 = vst.msk [vmem:[#allocation2 + $0x58] sm:$0xff] %vm334_vm0, %v2087_v21  ;;  %347 = vst.msk [vmem:[#allocation2 + $0x60] sm:$0xff] %vm334_vm0, %v2100_v28 }
  0x1e   : > { %v724_v57 = vpack.c.bf16 %v624_v53, %v622_v51  ;;  %v415_v58 = vrot.slane %v273_v54, 1  ;;  %v416_v59 = vrot.slane %v274_v55, 1  ;;  %v625_v6 = vrot.slane %v273_v54, 2  ;;  %348 = vst.msk [vmem:[#allocation2 + $0x68] sm:$0xff] %vm334_vm0, %v2121_v42 }
  0x1f   : > { %546 = vrot.lane.b32.xlu0 %v513_v43, %s1932_s22  ;;  %756 = vrot.lane.b32.xlu1 %v723_v44, %s1933_s23  ;;  %v418_v60 = vrot.slane %v275_v56, 1  ;;  %v626_v7 = vrot.slane %v274_v55, 2  ;;  %v628_v8 = vrot.slane %v275_v56, 2  ;;  %v277_v15 = vunpack.c.h.bf16 %v2014_v45 }
  0x20   : > { %v417_v0 = vsel %vm399_vm1, %v415_v58, %v416_v59  ;;  %v278_v16 = vunpack.c.l.bf16 %v224_v12  ;;  %v420_v18 = vrot.slane %v276_v14, 1  ;;  %v630_v2 = vrot.slane %v276_v14, 2 }
  0x21   : > { %v419_v3 = vsel %vm399_vm1, %v416_v59, %v418_v60  ;;  %v627_v10 = vsel %vm609_vm2, %v625_v6, %v626_v7  ;;  %v629_v11 = vsel %vm609_vm2, %v626_v7, %v628_v8  ;;  %v421_v19 = vrot.slane %v277_v15, 1 }
  0x22   : > { %v515_v5 = vpack.c.bf16 %v419_v3, %v417_v0  ;;  %v725_v13 = vpack.c.bf16 %v629_v11, %v627_v10  ;;  %v423_v20 = vrot.slane %v278_v16, 1  ;;  %v631_v23 = vrot.slane %v277_v15, 2  ;;  %v2145_v3 = vld [vmem:[%s1978_s20 + $0xa8] sm:$0xff]  }
  0x23   : > { %913 = vrot.lane.b32.xlu0 %v513_v43, %s1934_s24  ;;  %915 = vrot.lane.b32.xlu1 %v514_v50, %s1934_s24  ;;  %v422_v24 = vsel %vm399_vm1, %v420_v18, %v421_v19  ;;  %v633_v26 = vrot.slane %v278_v16, 2  ;;  %v279_v31 = vunpack.c.l.bf16 %v2025_v52  ;;  %v1364_v32 = vsel %vm1362_vm3, %v1898_v22, 0  ;;  %349 = vst.msk [vmem:[#allocation2 + $0x70] sm:$0xff] %vm334_vm0, %v2145_v3  ;;  %v2165_v18 = vld [vmem:[%s1978_s20 + $0xb4] sm:$0xff]  }
  0x24   : > { %v424_v25 = vsel %vm399_vm1, %v421_v19, %v423_v20  ;;  %v632_v30 = vsel %vm609_vm2, %v630_v2, %v631_v23  ;;  %v280_v34 = vunpack.c.h.bf16 %v2025_v52  ;;  %v281_v35 = vunpack.c.l.bf16 %v227_v27  ;;  %1827 = vmatpush3.bf16.msra.mxu0 %v1364_v32  ;;  %1865 = vmatpush3.bf16.msra.mxu1 %v1364_v32  ;;  %350 = vst.msk [vmem:[#allocation2 + $0x78] sm:$0xff] %vm334_vm0, %v2165_v18 }
  0x25   : > { %v516_v29 = vpack.c.bf16 %v424_v25, %v422_v24  ;;  %v634_v33 = vsel %vm609_vm2, %v631_v23, %v633_v26  ;;  %v425_v37 = vrot.slane %v279_v31, 1  ;;  %v282_v51 = vunpack.c.l.bf16 %v2037_v61  ;;  %v236_v25 = vld [vmem:[%s1978_s20 + $0x68] sm:$0x1] }
  0x26   : > { %v426_v38 = vrot.slane %v280_v34, 1  ;;  %v428_v39 = vrot.slane %v281_v35, 1  ;;  %v636_v46 = vrot.slane %v280_v34, 2  ;;  %v638_v47 = vrot.slane %v281_v35, 2 }
  0x27   : > { %987 = vrot.lane.b32.xlu0 %v723_v44, %s1935_s27  ;;  %989 = vrot.lane.b32.xlu1 %v724_v57, %s1935_s27  ;;  %v635_v44 = vrot.slane %v279_v31, 2  ;;  %v283_v53 = vunpack.c.h.bf16 %v2037_v61  ;;  %v430_v55 = vrot.slane %v282_v51, 1  ;;  %v640_v58 = vrot.slane %v282_v51, 2 }
  0x28   : > { %v427_v40 = vsel %vm399_vm1, %v425_v37, %v426_v38  ;;  %v429_v41 = vsel %vm399_vm1, %v426_v38, %v428_v39  ;;  %v639_v49 = vsel %vm609_vm2, %v636_v46, %v638_v47  ;;  %v285_v6 = vunpack.c.l.bf16 %v2045_v63  ;;  %v239_v38 = vld [vmem:[%s1978_s20 + $0x74] sm:$0x1] }
  0x29   : > { %v517_v43 = vpack.c.bf16 %v429_v41, %v427_v40  ;;  %v637_v48 = vsel %vm609_vm2, %v635_v44, %v636_v46  ;;  %v431_v56 = vrot.slane %v283_v53, 1  ;;  %v641_v59 = vrot.slane %v283_v53, 2 }
  0x2a   : > { %v286_v10 = vunpack.c.h.bf16 %v2045_v63  ;;  %v287_v11 = vunpack.c.l.bf16 %v233_v4  ;;  %v435_v12 = vrot.slane %v285_v6, 1  ;;  %v645_v20 = vrot.slane %v285_v6, 2  ;;  %v242_v4 = vld [vmem:[%s1978_s20 + $0x80] sm:$0x1] }
  0x2b   : > { %1054 = vrot.lane.b32.xlu0 %v1982_v1, %s1936_s30  ;;  %1056 = vrot.lane.b32.xlu1 %v2007_v36, %s1936_s30  ;;  %v2066_v1 = vld [vmem:[%s1978_s20 + $0x6c] sm:$0xff]   ;;  %v432_v60 = vsel %vm399_vm1, %v430_v55, %v431_v56  ;;  %v642_v7 = vsel %vm609_vm2, %v640_v58, %v641_v59  ;;  %v288_v26 = vunpack.c.l.bf16 %v2061_v9  ;;  %v289_v27 = vunpack.c.h.bf16 %v2061_v9 }
  0x2c   : > { %344 = vst.msk [vmem:[#allocation2 + $0x48] sm:$0xff] %vm334_vm0, %v2066_v1  ;;  %v438_v14 = vrot.slane %v287_v11, 1  ;;  %v646_v22 = vrot.slane %v286_v10, 2  ;;  %v648_v2 = vrot.slane %v287_v11, 2  ;;  %v291_v40 = vunpack.c.l.bf16 %v2066_v1 }
  0x2d   : > { %v441_v31 = vrot.slane %v289_v27, 1  ;;  %v651_v34 = vrot.slane %v289_v27, 2  ;;  %v292_v44 = vunpack.c.h.bf16 %v2066_v1  ;;  %v293_v46 = vunpack.c.l.bf16 %v239_v38 }
  0x2e   : > { %v647_v23 = vsel %vm609_vm2, %v645_v20, %v646_v22  ;;  %v649_v24 = vsel %vm609_vm2, %v646_v22, %v648_v2  ;;  %v655_v55 = vrot.slane %v291_v40, 2  ;;  %v294_v6 = vunpack.c.l.bf16 %v2082_v17 }
  0x2f   : > { %1131 = vrot.lane.b32.xlu0 %v514_v50, %s1937_s5  ;;  %1133 = vrot.lane.b32.xlu1 %v515_v5, %s1937_s5 }
  0x33   : > { %1205 = vrot.lane.b32.xlu0 %v724_v57, %s1938_s6  ;;  %548 = vrot.lane.b32.xlu1 %v514_v50, %s1932_s22  ;;  %v230_v50 = vld [vmem:[%s1978_s20 + $0x50] sm:$0x1] }
  0x34   : > { %v284_v54 = vunpack.c.l.bf16 %v230_v50 }
  0x36   : > { %v643_v0 = vrot.slane %v284_v54, 2 }
  0x37   : > { %1207 = vrot.lane.b32.xlu0 %v725_v13, %s1938_s6  ;;  %550 = vrot.lane.b32.xlu1 %v515_v5, %s1932_s22 }
  0x38   : > { %v644_v8 = vsel %vm609_vm2, %v641_v59, %v643_v0 }
  0x3b   : > { %758 = vrot.lane.b32.xlu0 %v724_v57, %s1933_s23  ;;  %760 = vrot.lane.b32.xlu1 %v725_v13, %s1933_s23  ;;  %v433_v57 = vrot.slane %v284_v54, 1 }
  0x3d   : > { %v434_v62 = vsel %vm399_vm1, %v431_v56, %v433_v57  ;;  %v656_v56 = vrot.slane %v292_v44, 2  ;;  %v658_v57 = vrot.slane %v293_v46, 2 }
  0x3f   : > { %840 = vrot.lane.b32.xlu0 %v2007_v36, %s1931_s21  ;;  %842 = vrot.lane.b32.xlu1 %v2014_v45, %s1931_s21  ;;  %v726_v36 = vpack.c.bf16 %v634_v33, %v632_v30  ;;  %v440_v30 = vrot.slane %v288_v26, 1  ;;  %v650_v33 = vrot.slane %v288_v26, 2  ;;  %v297_v26 = vunpack.c.l.bf16 %v2087_v21 }
  0x41   : > { %v442_v35 = vsel %vm399_vm1, %v440_v30, %v441_v31  ;;  %v652_v41 = vsel %vm609_vm2, %v650_v33, %v651_v34  ;;  %v298_v30 = vunpack.c.h.bf16 %v2087_v21 }
  0x43   : > { %917 = vrot.lane.b32.xlu0 %v515_v5, %s1934_s24  ;;  %919 = vrot.lane.b32.xlu1 %v516_v29, %s1934_s24  ;;  %v518_v5 = vpack.c.bf16 %v434_v62, %v432_v60  ;;  %v659_v60 = vsel %vm609_vm2, %v656_v56, %v658_v57  ;;  %v300_v57 = vunpack.c.l.bf16 %v2100_v28 }
  0x47   : > { %991 = vrot.lane.b32.xlu0 %v725_v13, %s1935_s27  ;;  %993 = vrot.lane.b32.xlu1 %v726_v36, %s1935_s27  ;;  %v436_v13 = vrot.slane %v286_v10, 1 }
  0x49   : > { %v437_v15 = vsel %vm399_vm1, %v435_v12, %v436_v13  ;;  %v439_v16 = vsel %vm399_vm1, %v436_v13, %v438_v14 }
  0x4a   : > { %v519_v19 = vpack.c.bf16 %v439_v16, %v437_v15  ;;  %v660_v16 = vrot.slane %v294_v6, 2 }
  0x4b   : > { %1058 = vrot.lane.b32.xlu0 %v2014_v45, %s1936_s30  ;;  %1060 = vrot.lane.b32.xlu1 %v2025_v52, %s1936_s30  ;;  %v727_v45 = vpack.c.bf16 %v639_v49, %v637_v48  ;;  %v445_v48 = vrot.slane %v291_v40, 1  ;;  %v448_v49 = vrot.slane %v293_v46, 1  ;;  %v665_v46 = vrot.slane %v297_v26, 2 }
  0x4f   : > { %1135 = vrot.lane.b32.xlu0 %v516_v29, %s1937_s5  ;;  %1137 = vrot.lane.b32.xlu1 %v517_v43, %s1937_s5 }
  0x53   : > { %1209 = vrot.lane.b32.xlu0 %v726_v36, %s1938_s6  ;;  %552 = vrot.lane.b32.xlu1 %v516_v29, %s1932_s22  ;;  %v290_v29 = vunpack.c.l.bf16 %v236_v25  ;;  %v245_v25 = vld [vmem:[%s1978_s20 + $0x8c] sm:$0x1] }
  0x55   : > { %v443_v32 = vrot.slane %v290_v29, 1  ;;  %v653_v37 = vrot.slane %v290_v29, 2 }
  0x57   : > { %1211 = vrot.lane.b32.xlu0 %v727_v45, %s1938_s6  ;;  %554 = vrot.lane.b32.xlu1 %v517_v43, %s1932_s22 }
  0x5b   : > { %762 = vrot.lane.b32.xlu0 %v726_v36, %s1933_s23  ;;  %764 = vrot.lane.b32.xlu1 %v727_v45, %s1933_s23  ;;  %v444_v36 = vsel %vm399_vm1, %v441_v31, %v443_v32  ;;  %v299_v31 = vunpack.c.l.bf16 %v245_v25 }
  0x5c   : > { %v520_v39 = vpack.c.bf16 %v444_v36, %v442_v35  ;;  %v456_v35 = vrot.slane %v298_v30, 1 }
  0x5d   : > { %v458_v36 = vrot.slane %v299_v31, 1 }
  0x5f   : > { %844 = vrot.lane.b32.xlu0 %v2025_v52, %s1931_s21  ;;  %846 = vrot.lane.b32.xlu1 %v2037_v61, %s1931_s21  ;;  %v728_v52 = vpack.c.bf16 %v644_v8, %v642_v7  ;;  %v295_v7 = vunpack.c.h.bf16 %v2082_v17  ;;  %v296_v8 = vunpack.c.l.bf16 %v242_v4  ;;  %v459_v40 = vsel %vm399_vm1, %v456_v35, %v458_v36 }
  0x61   : > { %v451_v12 = vrot.slane %v295_v7, 1  ;;  %v453_v13 = vrot.slane %v296_v8, 1  ;;  %v663_v2 = vrot.slane %v296_v8, 2 }
  0x63   : > { %921 = vrot.lane.b32.xlu0 %v517_v43, %s1934_s24  ;;  %923 = vrot.lane.b32.xlu1 %v518_v5, %s1934_s24  ;;  %v654_v43 = vsel %vm609_vm2, %v651_v34, %v653_v37  ;;  %v454_v22 = vsel %vm399_vm1, %v451_v12, %v453_v13  ;;  %v455_v34 = vrot.slane %v297_v26, 1 }
  0x64   : > { %v730_v47 = vpack.c.bf16 %v654_v43, %v652_v41 }
  0x67   : > { %995 = vrot.lane.b32.xlu0 %v727_v45, %s1935_s27  ;;  %997 = vrot.lane.b32.xlu1 %v728_v52, %s1935_s27 }
  0x6b   : > { %1062 = vrot.lane.b32.xlu0 %v2037_v61, %s1936_s30  ;;  %1064 = vrot.lane.b32.xlu1 %v2045_v63, %s1936_s30  ;;  %v729_v61 = vpack.c.bf16 %v649_v24, %v647_v23 }
  0x6f   : > { %1139 = vrot.lane.b32.xlu0 %v518_v5, %s1937_s5  ;;  %1141 = vrot.lane.b32.xlu1 %v519_v19, %s1937_s5 }
  0x73   : > { %1213 = vrot.lane.b32.xlu0 %v728_v52, %s1938_s6  ;;  %556 = vrot.lane.b32.xlu1 %v518_v5, %s1932_s22 }
  0x77   : > { %1215 = vrot.lane.b32.xlu0 %v729_v61, %s1938_s6  ;;  %558 = vrot.lane.b32.xlu1 %v519_v19, %s1932_s22 }
  0x7b   : > { %766 = vrot.lane.b32.xlu0 %v728_v52, %s1933_s23  ;;  %768 = vrot.lane.b32.xlu1 %v729_v61, %s1933_s23  ;;  %v450_v52 = vrot.slane %v294_v6, 1 }
  0x7d   : > { %v452_v20 = vsel %vm399_vm1, %v450_v52, %v451_v12 }
  0x7f   : > { %848 = vrot.lane.b32.xlu0 %v2045_v63, %s1931_s21  ;;  %850 = vrot.lane.b32.xlu1 %v2061_v9, %s1931_s21  ;;  %v446_v63 = vrot.slane %v292_v44, 1 }
  0x81   : > { %v447_v51 = vsel %vm399_vm1, %v445_v48, %v446_v63  ;;  %v449_v53 = vsel %vm399_vm1, %v446_v63, %v448_v49  ;;  %v668_v48 = vrot.slane %v299_v31, 2 }
  0x82   : > { %v2207_v54 = vpack.c.bf16 %v449_v53, %v447_v51 }
  0x83   : > { %925 = vrot.lane.b32.xlu0 %v519_v19, %s1934_s24  ;;  %927 = vrot.lane.b32.xlu1 %v520_v39, %s1934_s24  ;;  %v661_v19 = vrot.slane %v295_v7, 2  ;;  %v670_v7 = vrot.slane %v300_v57, 2 }
  0x84   : > { %v837_v50 = vpop.permute.xlu0 %836  ;;  %v839_v45 = vpop.permute.xlu1 %838 }
  0x85   : > { %v662_v27 = vsel %vm609_vm2, %v660_v16, %v661_v19  ;;  %v664_v29 = vsel %vm609_vm2, %v661_v19, %v663_v2 }
  0x87   : > { %999 = vrot.lane.b32.xlu0 %v729_v61, %s1935_s27  ;;  %1001 = vrot.lane.b32.xlu1 %v730_v47, %s1935_s27  ;;  %v522_v61 = vpack.c.bf16 %v454_v22, %v452_v20  ;;  %v303_v20 = vunpack.c.l.bf16 %v2121_v42  ;;  %v304_v22 = vunpack.c.h.bf16 %v2121_v42 }
  0x89   : > { %v465_v25 = vrot.slane %v303_v20, 1 }
  0x8b   : > { %1066 = vrot.lane.b32.xlu0 %v2061_v9, %s1936_s30  ;;  %1068 = vrot.lane.b32.xlu1 %v2066_v1, %s1936_s30  ;;  %v657_v9 = vsel %vm609_vm2, %v655_v55, %v656_v56  ;;  %v248_v55 = vld [vmem:[%s1978_s20 + $0x98] sm:$0x1] }
  0x8c   : > { %v731_v5 = vpack.c.bf16 %v659_v60, %v657_v9 }
  0x8d   : > { %v545_v58 = vpop.permute.xlu0 %544  ;;  %v755_v59 = vpop.permute.xlu1 %754 }
  0x8e   : > { %593 = vst.msk [vmem:[#allocation2] sm:$0xff] %vm592_vm4, %v545_v58  ;;  %v301_v58 = vunpack.c.h.bf16 %v2100_v28 }
  0x8f   : > { %803 = vst.msk [vmem:[#allocation2] sm:$0xff] %vm802_vm5, %v755_v59  ;;  %1143 = vrot.lane.b32.xlu0 %v520_v39, %s1937_s5  ;;  %1145 = vrot.lane.b32.xlu1 %v2207_v54, %s1937_s5  ;;  %v302_v59 = vunpack.c.l.bf16 %v248_v55 }
  0x90   : > { %885 = vst.msk [vmem:[#allocation2] sm:$0xff] %vm884_vm6, %v837_v50  ;;  %v671_v8 = vrot.slane %v301_v58, 2 }
  0x91   : > { %v547_v62 = vpop.permute.xlu0 %546  ;;  %v757_v0 = vpop.permute.xlu1 %756  ;;  %v463_v4 = vrot.slane %v302_v59, 1  ;;  %v673_v52 = vrot.slane %v302_v59, 2 }
  0x92   : > { %594 = vst.msk [vmem:[#allocation2 + $0x8] sm:$0xff] %vm592_vm4, %v547_v62  ;;  %v460_v62 = vrot.slane %v300_v57, 1  ;;  %v672_v16 = vsel %vm609_vm2, %v670_v7, %v671_v8  ;;  %v309_v7 = vunpack.c.l.bf16 %v2165_v18 }
  0x93   : > { %804 = vst.msk [vmem:[#allocation2 + $0x8] sm:$0xff] %vm802_vm5, %v757_v0  ;;  %1217 = vrot.lane.b32.xlu0 %v730_v47, %s1938_s6  ;;  %560 = vrot.lane.b32.xlu1 %v520_v39, %s1932_s22  ;;  %v457_v39 = vsel %vm399_vm1, %v455_v34, %v456_v35  ;;  %v461_v0 = vrot.slane %v301_v58, 1  ;;  %v674_v19 = vsel %vm609_vm2, %v671_v8, %v673_v52  ;;  %v675_v34 = vrot.slane %v303_v20, 2 }
  0x94   : > { %886 = vst.msk [vmem:[#allocation2 + $0x8] sm:$0xff] %vm884_vm6, %v839_v45  ;;  %v2264_v44 = vpack.c.bf16 %v459_v40, %v457_v39  ;;  %v676_v35 = vrot.slane %v304_v22, 2  ;;  %v310_v8 = vunpack.c.h.bf16 %v2165_v18 }
  0x95   : > { %v914_v10 = vpop.permute.xlu0 %913  ;;  %v916_v11 = vpop.permute.xlu1 %915 }
  0x96   : > { %962 = vst.msk [vmem:[#allocation2] sm:$0xff] %vm961_vm7, %v914_v10  ;;  %963 = vst.msk [vmem:[#allocation2 + $0x8] sm:$0xff] %vm961_vm7, %v916_v11  ;;  %v462_v10 = vsel %vm399_vm1, %v460_v62, %v461_v0  ;;  %v464_v11 = vsel %vm399_vm1, %v461_v0, %v463_v4  ;;  %v257_v0 = vld [vmem:[%s1978_s20 + $0xbc] sm:$0x1] }
  0x97   : > { %1219 = vrot.lane.b32.xlu0 %v731_v5, %s1938_s6  ;;  %562 = vrot.lane.b32.xlu1 %v2207_v54, %s1932_s22 }
  0x99   : > { %v988_v14 = vpop.permute.xlu0 %987  ;;  %v990_v15 = vpop.permute.xlu1 %989 }
  0x9a   : > { %1036 = vst.msk [vmem:[#allocation2] sm:$0xff] %vm1035_vm8, %v988_v14  ;;  %1037 = vst.msk [vmem:[#allocation2 + $0x8] sm:$0xff] %vm1035_vm8, %v990_v15  ;;  %v251_v14 = vld [vmem:[%s1978_s20 + $0xa4] sm:$0x1]  ;;  %v524_v15 = vpack.c.bf16 %v464_v11, %v462_v10  ;;  %v311_v10 = vunpack.c.l.bf16 %v257_v0 }
  0x9b   : > { %770 = vrot.lane.b32.xlu0 %v730_v47, %s1933_s23  ;;  %772 = vrot.lane.b32.xlu1 %v731_v5, %s1933_s23  ;;  %v666_v47 = vrot.slane %v298_v30, 2  ;;  %v305_v2 = vunpack.c.l.bf16 %v251_v14 }
  0x9c   : > { %v478_v14 = vrot.slane %v311_v10, 1 }
  0x9d   : > { %v1055_v23 = vpop.permute.xlu0 %1054  ;;  %v1057_v24 = vpop.permute.xlu1 %1056  ;;  %v669_v45 = vsel %vm609_vm2, %v666_v47, %v668_v48  ;;  %v468_v26 = vrot.slane %v305_v2, 1  ;;  %v678_v36 = vrot.slane %v305_v2, 2  ;;  %v306_v48 = vunpack.c.l.bf16 %v2145_v3 }
  0x9e   : > { %1103 = vst.msk [vmem:[#allocation2] sm:$0xff] %vm1102_vm9, %v1055_v23  ;;  %1104 = vst.msk [vmem:[#allocation2 + $0x8] sm:$0xff] %vm1102_vm9, %v1057_v24 }
  0x9f   : > { %852 = vrot.lane.b32.xlu0 %v2066_v1, %s1931_s21  ;;  %854 = vrot.lane.b32.xlu1 %v2082_v17, %s1931_s21  ;;  %v732_v1 = vpack.c.bf16 %v664_v29, %v662_v27  ;;  %v679_v40 = vsel %vm609_vm2, %v676_v35, %v678_v36 }
  0xa1   : > { %v1132_v32 = vpop.permute.xlu0 %1131  ;;  %v1134_v33 = vpop.permute.xlu1 %1133 }
  0xa2   : > { %1180 = vst.msk [vmem:[#allocation2] sm:$0xff] %vm1179_vm10, %v1132_v32  ;;  %1181 = vst.msk [vmem:[#allocation2 + $0x8] sm:$0xff] %vm1179_vm10, %v1134_v33 }
  0xa3   : > { %929 = vrot.lane.b32.xlu0 %v2207_v54, %s1934_s24  ;;  %931 = vrot.lane.b32.xlu1 %v522_v61, %s1934_s24 }
  0xa5   : > { %v1206_v37 = vpop.permute.xlu0 %1205  ;;  %v549_v38 = vpop.permute.xlu1 %548 }
  0xa6   : > { %1254 = vst.msk [vmem:[#allocation2] sm:$0xff] %vm1253_vm11, %v1206_v37 }
  0xa7   : > { %595 = vst.msk [vmem:[#allocation2 + $0x10] sm:$0xff] %vm592_vm4, %v549_v38  ;;  %1003 = vrot.lane.b32.xlu0 %v731_v5, %s1935_s27  ;;  %1005 = vrot.lane.b32.xlu1 %v732_v1, %s1935_s27 }
  0xa9   : > { %v1208_v41 = vpop.permute.xlu0 %1207  ;;  %v551_v43 = vpop.permute.xlu1 %550 }
  0xaa   : > { %1255 = vst.msk [vmem:[#allocation2 + $0x8] sm:$0xff] %vm1253_vm11, %v1208_v41 }
  0xab   : > { %596 = vst.msk [vmem:[#allocation2 + $0x18] sm:$0xff] %vm592_vm4, %v551_v43  ;;  %1070 = vrot.lane.b32.xlu0 %v2082_v17, %s1936_s30  ;;  %1072 = vrot.lane.b32.xlu1 %v2087_v21, %s1936_s30  ;;  %v667_v17 = vsel %vm609_vm2, %v665_v46, %v666_v47  ;;  %v254_v46 = vld [vmem:[%s1978_s20 + $0xb0] sm:$0x1] }
  0xac   : > { %v733_v56 = vpack.c.bf16 %v669_v45, %v667_v17  ;;  %v470_v45 = vrot.slane %v306_v48, 1 }
  0xad   : > { %v759_v63 = vpop.permute.xlu0 %758  ;;  %v761_v49 = vpop.permute.xlu1 %760  ;;  %v1270_v50 = vld [vmem:[#allocation2] sm:$0xff] }
  0xae   : > { %805 = vst.msk [vmem:[#allocation2 + $0x10] sm:$0xff] %vm802_vm5, %v759_v63  ;;  %806 = vst.msk [vmem:[#allocation2 + $0x18] sm:$0xff] %vm802_vm5, %v761_v49  ;;  %1828 = vmatprep.mubr.msk.bf16.mxu0 %vm1313_vm12, %v1270_v50  ;;  %v307_v63 = vunpack.c.h.bf16 %v2145_v3  ;;  %v308_v49 = vunpack.c.l.bf16 %v254_v46 }
  0xaf   : > { %1147 = vrot.lane.b32.xlu0 %v522_v61, %s1937_s5  ;;  %1149 = vrot.lane.b32.xlu1 %v2264_v44, %s1937_s5 }
  0xb0   : > { %v681_v57 = vrot.slane %v307_v63, 2 }
  0xb1   : > { %v841_v51 = vpop.permute.xlu0 %840  ;;  %v843_v53 = vpop.permute.xlu1 %842  ;;  %v1271_v54 = vld [vmem:[#allocation2 + $0x8] sm:$0xff] }
  0xb2   : > { %887 = vst.msk [vmem:[#allocation2 + $0x10] sm:$0xff] %vm884_vm6, %v841_v51  ;;  %888 = vst.msk [vmem:[#allocation2 + $0x18] sm:$0xff] %vm884_vm6, %v843_v53  ;;  %1829 = vmatmul.mubr.msk.bf16.vlgmr.msra.gmra.mrb[0].mxu0 %vm1313_vm12, %v1271_v54  ;;  %v471_v51 = vrot.slane %v307_v63, 1  ;;  %v473_v53 = vrot.slane %v308_v49, 1 }
  0xb3   : > { %1221 = vrot.lane.b32.xlu0 %v732_v1, %s1938_s6  ;;  %564 = vrot.lane.b32.xlu1 %v522_v61, %s1932_s22  ;;  %v466_v61 = vrot.slane %v304_v22, 1 }
  0xb4   : > { %v472_v58 = vsel %vm399_vm1, %v470_v45, %v471_v51  ;;  %v474_v59 = vsel %vm399_vm1, %v471_v51, %v473_v53  ;;  %v261_v45 = vld [vmem:[%s1978_s20 + $0xcc] sm:$0xff]   ;;  %v263_v51 = vld [vmem:[%s1978_s20 + $0xd4] sm:$0x1] }
  0xb5   : > { %v918_v9 = vpop.permute.xlu0 %917  ;;  %v920_v60 = vpop.permute.xlu1 %919  ;;  %v467_v30 = vsel %vm399_vm1, %v465_v25, %v466_v61  ;;  %v469_v31 = vsel %vm399_vm1, %v466_v61, %v468_v26  ;;  %v526_v4 = vpack.c.bf16 %v474_v59, %v472_v58  ;;  %v688_v25 = vrot.slane %v311_v10, 2 }
  0xb6   : > { %964 = vst.msk [vmem:[#allocation2 + $0x10] sm:$0xff] %vm961_vm7, %v918_v9  ;;  %965 = vst.msk [vmem:[#allocation2 + $0x18] sm:$0xff] %vm961_vm7, %v920_v60  ;;  %v683_v9 = vrot.slane %v308_v49, 2  ;;  %v317_v58 = vunpack.c.l.bf16 %v263_v51 }
  0xb7   : > { %1223 = vrot.lane.b32.xlu0 %v733_v56, %s1938_s6  ;;  %566 = vrot.lane.b32.xlu1 %v2264_v44, %s1932_s22 }
  0xb8   : > { %v1125_v0 = vrot.slane %v317_v58, 1 }
  0xb9   : > { %v992_v5 = vpop.permute.xlu0 %991  ;;  %v994_v6 = vpop.permute.xlu1 %993 }
  0xba   : > { %1038 = vst.msk [vmem:[#allocation2 + $0x10] sm:$0xff] %vm1035_vm8, %v992_v5  ;;  %1039 = vst.msk [vmem:[#allocation2 + $0x18] sm:$0xff] %vm1035_vm8, %v994_v6  ;;  %v684_v6 = vsel %vm609_vm2, %v681_v57, %v683_v9 }
  0xbb   : > { %774 = vrot.lane.b32.xlu0 %v732_v1, %s1933_s23  ;;  %776 = vrot.lane.b32.xlu1 %v733_v56, %s1933_s23  ;;  %v2321_v1 = vpack.c.bf16 %v469_v31, %v467_v30 }
  0xbd   : > { %v1059_v12 = vpop.permute.xlu0 %1058  ;;  %v1061_v13 = vpop.permute.xlu1 %1060 }
  0xbe   : > { %1105 = vst.msk [vmem:[#allocation2 + $0x10] sm:$0xff] %vm1102_vm9, %v1059_v12  ;;  %1106 = vst.msk [vmem:[#allocation2 + $0x18] sm:$0xff] %vm1102_vm9, %v1061_v13  ;;  %v475_v12 = vrot.slane %v309_v7, 1  ;;  %v476_v13 = vrot.slane %v310_v8, 1 }
  0xbf   : > { %856 = vrot.lane.b32.xlu0 %v2087_v21, %s1931_s21  ;;  %858 = vrot.lane.b32.xlu1 %v2100_v28, %s1931_s21  ;;  %v734_v21 = vpack.c.bf16 %v674_v19, %v672_v16 }
  0xc0   : > { %v477_v19 = vsel %vm399_vm1, %v475_v12, %v476_v13  ;;  %v479_v20 = vsel %vm399_vm1, %v476_v13, %v478_v14 }
  0xc1   : > { %v1136_v23 = vpop.permute.xlu0 %1135  ;;  %v1138_v24 = vpop.permute.xlu1 %1137 }
  0xc2   : > { %1182 = vst.msk [vmem:[#allocation2 + $0x10] sm:$0xff] %vm1179_vm10, %v1136_v23  ;;  %1183 = vst.msk [vmem:[#allocation2 + $0x18] sm:$0xff] %vm1179_vm10, %v1138_v24  ;;  %v2378_v23 = vpack.c.bf16 %v479_v20, %v477_v19  ;;  %v685_v24 = vrot.slane %v309_v7, 2 }
  0xc3   : > { %933 = vrot.lane.b32.xlu0 %v2264_v44, %s1934_s24  ;;  %935 = vrot.lane.b32.xlu1 %v524_v15, %s1934_s24 }
  0xc5   : > { %v1210_v27 = vpop.permute.xlu0 %1209  ;;  %v553_v29 = vpop.permute.xlu1 %552 }
  0xc6   : > { %1256 = vst.msk [vmem:[#allocation2 + $0x10] sm:$0xff] %vm1253_vm11, %v1210_v27 }
  0xc7   : > { %597 = vst.msk [vmem:[#allocation2 + $0x20] sm:$0xff] %vm592_vm4, %v553_v29  ;;  %1007 = vrot.lane.b32.xlu0 %v733_v56, %s1935_s27  ;;  %1009 = vrot.lane.b32.xlu1 %v734_v21, %s1935_s27  ;;  %v680_v56 = vrot.slane %v306_v48, 2 }
  0xc9   : > { %v1212_v32 = vpop.permute.xlu0 %1211  ;;  %v555_v33 = vpop.permute.xlu1 %554  ;;  %v682_v5 = vsel %vm609_vm2, %v680_v56, %v681_v57  ;;  %v315_v56 = vunpack.c.l.bf16 %v261_v45  ;;  %v316_v57 = vunpack.c.h.bf16 %v261_v45 }
  0xca   : > { %1257 = vst.msk [vmem:[#allocation2 + $0x18] sm:$0xff] %vm1253_vm11, %v1212_v32 }
  0xcb   : > { %598 = vst.msk [vmem:[#allocation2 + $0x28] sm:$0xff] %vm592_vm4, %v555_v33  ;;  %1074 = vrot.lane.b32.xlu0 %v2100_v28, %s1936_s30  ;;  %1076 = vrot.lane.b32.xlu1 %v2121_v42, %s1936_s30  ;;  %v677_v28 = vsel %vm609_vm2, %v675_v34, %v676_v35  ;;  %v2389_v33 = vld [vmem:[%s1978_s20 + $0xc0] sm:$0xff]   ;;  %v1197_v7 = vrot.slane %v316_v57, 2 }
  0xcc   : > { %v735_v47 = vpack.c.bf16 %v679_v40, %v677_v28  ;;  %v312_v35 = vunpack.c.l.bf16 %v2389_v33  ;;  %v313_v36 = vunpack.c.h.bf16 %v2389_v33 }
  0xcd   : > { %v763_v37 = vpop.permute.xlu0 %762  ;;  %v765_v38 = vpop.permute.xlu1 %764  ;;  %v1272_v39 = vld [vmem:[#allocation2 + $0x10] sm:$0xff] }
  0xce   : > { %807 = vst.msk [vmem:[#allocation2 + $0x20] sm:$0xff] %vm802_vm5, %v763_v37  ;;  %808 = vst.msk [vmem:[#allocation2 + $0x28] sm:$0xff] %vm802_vm5, %v765_v38  ;;  %1832 = vmatprep.mubr.msk.bf16.mxu0 %vm1313_vm12, %v1272_v39  ;;  %v904_v28 = vrot.slane %v312_v35, 1  ;;  %v905_v40 = vrot.slane %v313_v36, 1  ;;  %v978_v46 = vrot.slane %v312_v35, 2 }
  0xcf   : > { %1151 = vrot.lane.b32.xlu0 %v524_v15, %s1937_s5  ;;  %1153 = vrot.lane.b32.xlu1 %v2321_v1, %s1937_s5 }
  0xd0   : > { %v906_v48 = vsel %vm399_vm1, %v904_v28, %v905_v40 }
  0xd1   : > { %v845_v41 = vpop.permute.xlu0 %844  ;;  %v847_v43 = vpop.permute.xlu1 %846  ;;  %v1273_v44 = vld [vmem:[#allocation2 + $0x18] sm:$0xff] }
  0xd2   : > { %889 = vst.msk [vmem:[#allocation2 + $0x20] sm:$0xff] %vm884_vm6, %v845_v41  ;;  %890 = vst.msk [vmem:[#allocation2 + $0x28] sm:$0xff] %vm884_vm6, %v847_v43  ;;  %1833 = vmatmul.mubr.msk.bf16.gmra.mrb[4].mxu0 %vm1313_vm12, %v1273_v44 }
  0xd3   : > { %1225 = vrot.lane.b32.xlu0 %v734_v21, %s1938_s6  ;;  %568 = vrot.lane.b32.xlu1 %v524_v15, %s1932_s22 }
  0xd5   : > { %v922_v50 = vpop.permute.xlu0 %921  ;;  %v924_v17 = vpop.permute.xlu1 %923 }
  0xd6   : > { %966 = vst.msk [vmem:[#allocation2 + $0x20] sm:$0xff] %vm961_vm7, %v922_v50  ;;  %967 = vst.msk [vmem:[#allocation2 + $0x28] sm:$0xff] %vm961_vm7, %v924_v17 }
  0xd7   : > { %1227 = vrot.lane.b32.xlu0 %v735_v47, %s1938_s6  ;;  %570 = vrot.lane.b32.xlu1 %v2321_v1, %s1932_s22 }
  0xd9   : > { %v996_v54 = vpop.permute.xlu0 %995  ;;  %v998_v55 = vpop.permute.xlu1 %997 }
  0xda   : > { %1040 = vst.msk [vmem:[#allocation2 + $0x20] sm:$0xff] %vm1035_vm8, %v996_v54  ;;  %1041 = vst.msk [vmem:[#allocation2 + $0x28] sm:$0xff] %vm1035_vm8, %v998_v55 }
  0xdb   : > { %778 = vrot.lane.b32.xlu0 %v734_v21, %s1933_s23  ;;  %780 = vrot.lane.b32.xlu1 %v735_v47, %s1933_s23  ;;  %v686_v21 = vrot.slane %v310_v8, 2 }
  0xdd   : > { %v1063_v60 = vpop.permute.xlu0 %1062  ;;  %v1065_v62 = vpop.permute.xlu1 %1064  ;;  %v689_v29 = vsel %vm609_vm2, %v686_v21, %v688_v25 }
  0xde   : > { %1107 = vst.msk [vmem:[#allocation2 + $0x20] sm:$0xff] %vm1102_vm9, %v1063_v60  ;;  %1108 = vst.msk [vmem:[#allocation2 + $0x28] sm:$0xff] %vm1102_vm9, %v1065_v62  ;;  %v1122_v60 = vrot.slane %v315_v56, 1  ;;  %v1123_v62 = vrot.slane %v316_v57, 1 }
  0xdf   : > { %860 = vrot.lane.b32.xlu0 %v2121_v42, %s1931_s21  ;;  %862 = vrot.lane.b32.xlu1 %v2145_v3, %s1931_s21  ;;  %v736_v42 = vpack.c.bf16 %v684_v6, %v682_v5  ;;  %v1196_v6 = vrot.slane %v315_v56, 2 }
  0xe0   : > { %v1124_v8 = vsel %vm399_vm1, %v1122_v60, %v1123_v62  ;;  %v1126_v10 = vsel %vm399_vm1, %v1123_v62, %v1125_v0 }
  0xe1   : > { %v1140_v11 = vpop.permute.xlu0 %1139  ;;  %v1142_v52 = vpop.permute.xlu1 %1141  ;;  %v1129_v12 = vpack.c.bf16 %v1126_v10, %v1124_v8  ;;  %v1198_v13 = vsel %vm609_vm2, %v1196_v6, %v1197_v7 }
  0xe2   : > { %1184 = vst.msk [vmem:[#allocation2 + $0x20] sm:$0xff] %vm1179_vm10, %v1140_v11  ;;  %1185 = vst.msk [vmem:[#allocation2 + $0x28] sm:$0xff] %vm1179_vm10, %v1142_v52  ;;  %v1199_v11 = vrot.slane %v317_v58, 2 }
  0xe3   : > { %937 = vrot.lane.b32.xlu0 %v2321_v1, %s1934_s24  ;;  %939 = vrot.lane.b32.xlu1 %v526_v4, %s1934_s24  ;;  %v260_v1 = vld [vmem:[%s1978_s20 + $0xc8] sm:$0x1]  ;;  %s208_s20 = scalar_lea.vmem %s2600_s4, %s1761_s17 }
  0xe4   : > { %v314_v37 = vunpack.c.l.bf16 %v260_v1  ;;  %v1200_v14 = vsel %vm609_vm2, %v1197_v7, %v1199_v11 }
  0xe5   : > { %v1214_v15 = vpop.permute.xlu0 %1213  ;;  %v557_v16 = vpop.permute.xlu1 %556  ;;  %v1203_v20 = vpack.c.bf16 %v1200_v14, %v1198_v13 }
  0xe6   : > { %1258 = vst.msk [vmem:[#allocation2 + $0x20] sm:$0xff] %vm1253_vm11, %v1214_v15  ;;  %v907_v41 = vrot.slane %v314_v37, 1  ;;  %v981_v49 = vrot.slane %v314_v37, 2 }
  0xe7   : > { %599 = vst.msk [vmem:[#allocation2 + $0x30] sm:$0xff] %vm592_vm4, %v557_v16  ;;  %1011 = vrot.lane.b32.xlu0 %v735_v47, %s1935_s27  ;;  %1013 = vrot.lane.b32.xlu1 %v736_v42, %s1935_s27  ;;  %v979_v47 = vrot.slane %v313_v36, 2 }
  0xe8   : > { %v908_v63 = vsel %vm399_vm1, %v905_v40, %v907_v41 }
  0xe9   : > { %v1216_v22 = vpop.permute.xlu0 %1215  ;;  %v559_v2 = vpop.permute.xlu1 %558  ;;  %v911_v53 = vpack.c.bf16 %v908_v63, %v906_v48  ;;  %v980_v54 = vsel %vm609_vm2, %v978_v46, %v979_v47  ;;  %v982_v55 = vsel %vm609_vm2, %v979_v47, %v981_v49 }
  0xea   : > { %1259 = vst.msk [vmem:[#allocation2 + $0x28] sm:$0xff] %vm1253_vm11, %v1216_v22 }
  0xeb   : > { %600 = vst.msk [vmem:[#allocation2 + $0x38] sm:$0xff] %vm592_vm4, %v559_v2  ;;  %1078 = vrot.lane.b32.xlu0 %v2145_v3, %s1936_s30  ;;  %1080 = vrot.lane.b32.xlu1 %v2165_v18, %s1936_s30  ;;  %v687_v3 = vsel %vm609_vm2, %v685_v24, %v686_v21 }
  0xec   : > { %v737_v34 = vpack.c.bf16 %v689_v29, %v687_v3 }
  0xed   : > { %v767_v61 = vpop.permute.xlu0 %766  ;;  %v769_v26 = vpop.permute.xlu1 %768  ;;  %v1274_v27 = vld [vmem:[#allocation2 + $0x20] sm:$0xff] }
  0xee   : > { %809 = vst.msk [vmem:[#allocation2 + $0x30] sm:$0xff] %vm802_vm5, %v767_v61  ;;  %810 = vst.msk [vmem:[#allocation2 + $0x38] sm:$0xff] %vm802_vm5, %v769_v26  ;;  %1836 = vmatprep.mubr.msk.bf16.mxu0 %vm1313_vm12, %v1274_v27 }
  0xef   : > { %1155 = vrot.lane.b32.xlu0 %v526_v4, %s1937_s5  ;;  %1157 = vrot.lane.b32.xlu1 %v2378_v23, %s1937_s5 }
  0xf1   : > { %v849_v30 = vpop.permute.xlu0 %848  ;;  %v851_v31 = vpop.permute.xlu1 %850  ;;  %v1275_v32 = vld [vmem:[#allocation2 + $0x28] sm:$0xff] }
  0xf2   : > { %891 = vst.msk [vmem:[#allocation2 + $0x30] sm:$0xff] %vm884_vm6, %v849_v30  ;;  %892 = vst.msk [vmem:[#allocation2 + $0x38] sm:$0xff] %vm884_vm6, %v851_v31  ;;  %1837 = vmatmul.mubr.msk.bf16.gmra.mrb[8].mxu0 %vm1313_vm12, %v1275_v32 }
  0xf3   : > { %1229 = vrot.lane.b32.xlu0 %v736_v42, %s1938_s6  ;;  %572 = vrot.lane.b32.xlu1 %v526_v4, %s1932_s22 }
  0xf5   : > { %v926_v38 = vpop.permute.xlu0 %925  ;;  %v928_v39 = vpop.permute.xlu1 %927 }
  0xf6   : > { %968 = vst.msk [vmem:[#allocation2 + $0x30] sm:$0xff] %vm961_vm7, %v926_v38  ;;  %969 = vst.msk [vmem:[#allocation2 + $0x38] sm:$0xff] %vm961_vm7, %v928_v39 }
  0xf7   : > { %1231 = vrot.lane.b32.xlu0 %v737_v34, %s1938_s6  ;;  %574 = vrot.lane.b32.xlu1 %v2378_v23, %s1932_s22 }
  0xf9   : > { %v1000_v43 = vpop.permute.xlu0 %999  ;;  %v1002_v44 = vpop.permute.xlu1 %1001 }
  0xfa   : > { %1042 = vst.msk [vmem:[#allocation2 + $0x30] sm:$0xff] %vm1035_vm8, %v1000_v43  ;;  %1043 = vst.msk [vmem:[#allocation2 + $0x38] sm:$0xff] %vm1035_vm8, %v1002_v44 }
  0xfb   : > { %782 = vrot.lane.b32.xlu0 %v736_v42, %s1933_s23  ;;  %784 = vrot.lane.b32.xlu1 %v737_v34, %s1933_s23 }
  0xfd   : > { %v1067_v50 = vpop.permute.xlu0 %1066  ;;  %v1069_v17 = vpop.permute.xlu1 %1068 }
  0xfe   : > { %1109 = vst.msk [vmem:[#allocation2 + $0x30] sm:$0xff] %vm1102_vm9, %v1067_v50  ;;  %1110 = vst.msk [vmem:[#allocation2 + $0x38] sm:$0xff] %vm1102_vm9, %v1069_v17 }
  0xff   : > { %864 = vrot.lane.b32.xlu0 %v2165_v18, %s1931_s21  ;;  %866 = vrot.lane.b32.xlu1 %v2389_v33, %s1931_s21  ;;  %v985_v18 = vpack.c.bf16 %v982_v55, %v980_v54 }
 0x101   : > { %v1144_v59 = vpop.permute.xlu0 %1143  ;;  %v1146_v9 = vpop.permute.xlu1 %1145 }
 0x102   : > { %1186 = vst.msk [vmem:[#allocation2 + $0x30] sm:$0xff] %vm1179_vm10, %v1144_v59  ;;  %1187 = vst.msk [vmem:[#allocation2 + $0x38] sm:$0xff] %vm1179_vm10, %v1146_v9 }
 0x103   : > { %941 = vrot.lane.b32.xlu0 %v2378_v23, %s1934_s24  ;;  %943 = vrot.lane.b32.xlu1 %v911_v53, %s1934_s24 }
 0x105   : > { %v1218_v4 = vpop.permute.xlu0 %1217  ;;  %v561_v5 = vpop.permute.xlu1 %560 }
 0x106   : > { %1260 = vst.msk [vmem:[#allocation2 + $0x30] sm:$0xff] %vm1253_vm11, %v1218_v4 }
 0x107   : > { %601 = vst.msk [vmem:[#allocation2 + $0x40] sm:$0xff] %vm592_vm4, %v561_v5  ;;  %1015 = vrot.lane.b32.xlu0 %v737_v34, %s1935_s27  ;;  %1017 = vrot.lane.b32.xlu1 %v985_v18, %s1935_s27 }
 0x109   : > { %v1220_v52 = vpop.permute.xlu0 %1219  ;;  %v563_v42 = vpop.permute.xlu1 %562 }
 0x10a   : > { %1261 = vst.msk [vmem:[#allocation2 + $0x38] sm:$0xff] %vm1253_vm11, %v1220_v52 }
 0x10b   : > { %602 = vst.msk [vmem:[#allocation2 + $0x48] sm:$0xff] %vm592_vm4, %v563_v42  ;;  %1082 = vrot.lane.b32.xlu0 %v2389_v33, %s1936_s30  ;;  %1084 = vrot.lane.b32.xlu1 %v261_v45, %s1936_s30 }
 0x10d   : > { %v771_v15 = vpop.permute.xlu0 %770  ;;  %v773_v16 = vpop.permute.xlu1 %772  ;;  %v1276_v19 = vld [vmem:[#allocation2 + $0x30] sm:$0xff] }
 0x10e   : > { %811 = vst.msk [vmem:[#allocation2 + $0x40] sm:$0xff] %vm802_vm5, %v771_v15  ;;  %812 = vst.msk [vmem:[#allocation2 + $0x48] sm:$0xff] %vm802_vm5, %v773_v16  ;;  %1840 = vmatprep.mubr.msk.bf16.mxu0 %vm1313_vm12, %v1276_v19 }
 0x10f   : > { %1159 = vrot.lane.b32.xlu0 %v911_v53, %s1937_s5  ;;  %1161 = vrot.lane.b32.xlu1 %v1129_v12, %s1937_s5 }
 0x111   : > { %v853_v22 = vpop.permute.xlu0 %852  ;;  %v855_v2 = vpop.permute.xlu1 %854  ;;  %v1277_v23 = vld [vmem:[#allocation2 + $0x38] sm:$0xff] }
 0x112   : > { %893 = vst.msk [vmem:[#allocation2 + $0x40] sm:$0xff] %vm884_vm6, %v853_v22  ;;  %894 = vst.msk [vmem:[#allocation2 + $0x48] sm:$0xff] %vm884_vm6, %v855_v2  ;;  %1841 = vmatmul.mubr.msk.bf16.gmra.mrb[12].mxu0 %vm1313_vm12, %v1277_v23  ;;  %v2514_v2 = vld [vmem:[%s2598_s2] ss:$0 sm:$0xff] }
 0x113   : > { %1233 = vrot.lane.b32.xlu0 %v985_v18, %s1938_s6  ;;  %1235 = vrot.lane.b32.xlu1 %v1203_v20, %s1938_s6 }
 0x115   : > { %v930_v24 = vpop.permute.xlu0 %929  ;;  %v932_v21 = vpop.permute.xlu1 %931 }
 0x116   : > { %970 = vst.msk [vmem:[#allocation2 + $0x40] sm:$0xff] %vm961_vm7, %v930_v24  ;;  %971 = vst.msk [vmem:[#allocation2 + $0x48] sm:$0xff] %vm961_vm7, %v932_v21 }
 0x119   : > { %v1004_v25 = vpop.permute.xlu0 %1003  ;;  %v1006_v61 = vpop.permute.xlu1 %1005 }
 0x11a   : > { %1044 = vst.msk [vmem:[#allocation2 + $0x40] sm:$0xff] %vm1035_vm8, %v1004_v25  ;;  %1045 = vst.msk [vmem:[#allocation2 + $0x48] sm:$0xff] %vm1035_vm8, %v1006_v61 }
 0x11d   : > { %v1071_v26 = vpop.permute.xlu0 %1070  ;;  %v1073_v27 = vpop.permute.xlu1 %1072 }
 0x11e   : > { %1111 = vst.msk [vmem:[#allocation2 + $0x40] sm:$0xff] %vm1102_vm9, %v1071_v26  ;;  %1112 = vst.msk [vmem:[#allocation2 + $0x48] sm:$0xff] %vm1102_vm9, %v1073_v27 }
 0x121   : > { %v1148_v3 = vpop.permute.xlu0 %1147  ;;  %v1150_v29 = vpop.permute.xlu1 %1149 }
 0x122   : > { %1188 = vst.msk [vmem:[#allocation2 + $0x40] sm:$0xff] %vm1179_vm10, %v1148_v3  ;;  %1189 = vst.msk [vmem:[#allocation2 + $0x48] sm:$0xff] %vm1179_vm10, %v1150_v29 }
 0x125   : > { %v1222_v30 = vpop.permute.xlu0 %1221  ;;  %v565_v31 = vpop.permute.xlu1 %564 }
 0x126   : > { %1262 = vst.msk [vmem:[#allocation2 + $0x40] sm:$0xff] %vm1253_vm11, %v1222_v30 }
 0x127   : > { %603 = vst.msk [vmem:[#allocation2 + $0x50] sm:$0xff] %vm592_vm4, %v565_v31 }
 0x129   : > { %v1224_v32 = vpop.permute.xlu0 %1223  ;;  %v567_v33 = vpop.permute.xlu1 %566 }
 0x12a   : > { %1263 = vst.msk [vmem:[#allocation2 + $0x48] sm:$0xff] %vm1253_vm11, %v1224_v32 }
 0x12b   : > { %604 = vst.msk [vmem:[#allocation2 + $0x58] sm:$0xff] %vm592_vm4, %v567_v33 }
 0x12d   : > { %v775_v1 = vpop.permute.xlu0 %774  ;;  %v777_v34 = vpop.permute.xlu1 %776  ;;  %v1278_v35 = vld [vmem:[#allocation2 + $0x40] sm:$0xff] }
 0x12e   : > { %813 = vst.msk [vmem:[#allocation2 + $0x50] sm:$0xff] %vm802_vm5, %v775_v1  ;;  %814 = vst.msk [vmem:[#allocation2 + $0x58] sm:$0xff] %vm802_vm5, %v777_v34  ;;  %1844 = vmatprep.mubr.msk.bf16.mxu1 %vm1313_vm12, %v1278_v35 }
 0x131   : > { %v857_v36 = vpop.permute.xlu0 %856  ;;  %v859_v37 = vpop.permute.xlu1 %858  ;;  %v1279_v38 = vld [vmem:[#allocation2 + $0x48] sm:$0xff] }
 0x132   : > { %895 = vst.msk [vmem:[#allocation2 + $0x50] sm:$0xff] %vm884_vm6, %v857_v36  ;;  %896 = vst.msk [vmem:[#allocation2 + $0x58] sm:$0xff] %vm884_vm6, %v859_v37  ;;  %1845 = vmatmul.mubr.msk.bf16.vlgmr.msra.gmra.mrb[0].mxu1 %vm1313_vm12, %v1279_v38 }
 0x135   : > { %v934_v39 = vpop.permute.xlu0 %933  ;;  %v936_v28 = vpop.permute.xlu1 %935 }
 0x136   : > { %972 = vst.msk [vmem:[#allocation2 + $0x50] sm:$0xff] %vm961_vm7, %v934_v39  ;;  %973 = vst.msk [vmem:[#allocation2 + $0x58] sm:$0xff] %vm961_vm7, %v936_v28 }
 0x139   : > { %v1008_v40 = vpop.permute.xlu0 %1007  ;;  %v1010_v41 = vpop.permute.xlu1 %1009 }
 0x13a   : > { %1046 = vst.msk [vmem:[#allocation2 + $0x50] sm:$0xff] %vm1035_vm8, %v1008_v40  ;;  %1047 = vst.msk [vmem:[#allocation2 + $0x58] sm:$0xff] %vm1035_vm8, %v1010_v41 }
 0x13d   : > { %v1075_v43 = vpop.permute.xlu0 %1074  ;;  %v1077_v44 = vpop.permute.xlu1 %1076 }
 0x13e   : > { %1113 = vst.msk [vmem:[#allocation2 + $0x50] sm:$0xff] %vm1102_vm9, %v1075_v43  ;;  %1114 = vst.msk [vmem:[#allocation2 + $0x58] sm:$0xff] %vm1102_vm9, %v1077_v44 }
 0x141   : > { %v1152_v46 = vpop.permute.xlu0 %1151  ;;  %v1154_v47 = vpop.permute.xlu1 %1153 }
 0x142   : > { %1190 = vst.msk [vmem:[#allocation2 + $0x50] sm:$0xff] %vm1179_vm10, %v1152_v46  ;;  %1191 = vst.msk [vmem:[#allocation2 + $0x58] sm:$0xff] %vm1179_vm10, %v1154_v47 }
 0x145   : > { %v1226_v48 = vpop.permute.xlu0 %1225  ;;  %v569_v63 = vpop.permute.xlu1 %568 }
 0x146   : > { %1264 = vst.msk [vmem:[#allocation2 + $0x50] sm:$0xff] %vm1253_vm11, %v1226_v48 }
 0x147   : > { %605 = vst.msk [vmem:[#allocation2 + $0x60] sm:$0xff] %vm592_vm4, %v569_v63 }
 0x149   : > { %v1228_v49 = vpop.permute.xlu0 %1227  ;;  %v571_v50 = vpop.permute.xlu1 %570 }
 0x14a   : > { %1265 = vst.msk [vmem:[#allocation2 + $0x58] sm:$0xff] %vm1253_vm11, %v1228_v49 }
 0x14b   : > { %606 = vst.msk [vmem:[#allocation2 + $0x68] sm:$0xff] %vm592_vm4, %v571_v50 }
 0x14d   : > { %v779_v17 = vpop.permute.xlu0 %778  ;;  %v781_v45 = vpop.permute.xlu1 %780  ;;  %v1280_v51 = vld [vmem:[#allocation2 + $0x50] sm:$0xff] }
 0x14e   : > { %815 = vst.msk [vmem:[#allocation2 + $0x60] sm:$0xff] %vm802_vm5, %v779_v17  ;;  %816 = vst.msk [vmem:[#allocation2 + $0x68] sm:$0xff] %vm802_vm5, %v781_v45  ;;  %1848 = vmatprep.mubr.msk.bf16.mxu1 %vm1313_vm12, %v1280_v51 }
 0x151   : > { %v861_v53 = vpop.permute.xlu0 %860  ;;  %v863_v54 = vpop.permute.xlu1 %862  ;;  %v1281_v55 = vld [vmem:[#allocation2 + $0x58] sm:$0xff] }
 0x152   : > { %897 = vst.msk [vmem:[#allocation2 + $0x60] sm:$0xff] %vm884_vm6, %v861_v53  ;;  %898 = vst.msk [vmem:[#allocation2 + $0x68] sm:$0xff] %vm884_vm6, %v863_v54  ;;  %1849 = vmatmul.mubr.msk.bf16.gmra.mrb[4].mxu1 %vm1313_vm12, %v1281_v55 }
 0x155   : > { %v938_v56 = vpop.permute.xlu0 %937  ;;  %v940_v57 = vpop.permute.xlu1 %939 }
 0x156   : > { %974 = vst.msk [vmem:[#allocation2 + $0x60] sm:$0xff] %vm961_vm7, %v938_v56  ;;  %975 = vst.msk [vmem:[#allocation2 + $0x68] sm:$0xff] %vm961_vm7, %v940_v57 }
 0x159   : > { %v1012_v58 = vpop.permute.xlu0 %1011  ;;  %v1014_v59 = vpop.permute.xlu1 %1013 }
 0x15a   : > { %1048 = vst.msk [vmem:[#allocation2 + $0x60] sm:$0xff] %vm1035_vm8, %v1012_v58  ;;  %1049 = vst.msk [vmem:[#allocation2 + $0x68] sm:$0xff] %vm1035_vm8, %v1014_v59 }
 0x15d   : > { %v1079_v9 = vpop.permute.xlu0 %1078  ;;  %v1081_v18 = vpop.permute.xlu1 %1080 }
 0x15e   : > { %1115 = vst.msk [vmem:[#allocation2 + $0x60] sm:$0xff] %vm1102_vm9, %v1079_v9  ;;  %1116 = vst.msk [vmem:[#allocation2 + $0x68] sm:$0xff] %vm1102_vm9, %v1081_v18 }
 0x161   : > { %v1156_v60 = vpop.permute.xlu0 %1155  ;;  %v1158_v62 = vpop.permute.xlu1 %1157 }
 0x162   : > { %1192 = vst.msk [vmem:[#allocation2 + $0x60] sm:$0xff] %vm1179_vm10, %v1156_v60  ;;  %1193 = vst.msk [vmem:[#allocation2 + $0x68] sm:$0xff] %vm1179_vm10, %v1158_v62 }
 0x165   : > { %v1230_v0 = vpop.permute.xlu0 %1229  ;;  %v573_v4 = vpop.permute.xlu1 %572 }
 0x166   : > { %1266 = vst.msk [vmem:[#allocation2 + $0x60] sm:$0xff] %vm1253_vm11, %v1230_v0 }
 0x167   : > { %607 = vst.msk [vmem:[#allocation2 + $0x70] sm:$0xff] %vm592_vm4, %v573_v4 }
 0x169   : > { %v1232_v5 = vpop.permute.xlu0 %1231  ;;  %v575_v6 = vpop.permute.xlu1 %574 }
 0x16a   : > { %1267 = vst.msk [vmem:[#allocation2 + $0x68] sm:$0xff] %vm1253_vm11, %v1232_v5 }
 0x16b   : > { %608 = vst.msk [vmem:[#allocation2 + $0x78] sm:$0xff] %vm592_vm4, %v575_v6 }
 0x16d   : > { %v783_v7 = vpop.permute.xlu0 %782  ;;  %v785_v8 = vpop.permute.xlu1 %784  ;;  %v1282_v10 = vld [vmem:[#allocation2 + $0x60] sm:$0xff] }
 0x16e   : > { %817 = vst.msk [vmem:[#allocation2 + $0x70] sm:$0xff] %vm802_vm5, %v783_v7  ;;  %818 = vst.msk [vmem:[#allocation2 + $0x78] sm:$0xff] %vm802_vm5, %v785_v8  ;;  %1852 = vmatprep.mubr.msk.bf16.mxu1 %vm1313_vm12, %v1282_v10 }
 0x171   : > { %v865_v11 = vpop.permute.xlu0 %864  ;;  %v867_v52 = vpop.permute.xlu1 %866  ;;  %v1283_v42 = vld [vmem:[#allocation2 + $0x68] sm:$0xff] }
 0x172   : > { %899 = vst.msk [vmem:[#allocation2 + $0x70] sm:$0xff] %vm884_vm6, %v865_v11  ;;  %900 = vst.msk [vmem:[#allocation2 + $0x78] sm:$0xff] %vm884_vm6, %v867_v52  ;;  %1853 = vmatmul.mubr.msk.bf16.gmra.mrb[8].mxu1 %vm1313_vm12, %v1283_v42 }
 0x175   : > { %v942_v12 = vpop.permute.xlu0 %941  ;;  %v944_v13 = vpop.permute.xlu1 %943 }
 0x176   : > { %976 = vst.msk [vmem:[#allocation2 + $0x70] sm:$0xff] %vm961_vm7, %v942_v12  ;;  %977 = vst.msk [vmem:[#allocation2 + $0x78] sm:$0xff] %vm961_vm7, %v944_v13 }
 0x179   : > { %v1016_v14 = vpop.permute.xlu0 %1015  ;;  %v1018_v15 = vpop.permute.xlu1 %1017 }
 0x17a   : > { %1050 = vst.msk [vmem:[#allocation2 + $0x70] sm:$0xff] %vm1035_vm8, %v1016_v14  ;;  %1051 = vst.msk [vmem:[#allocation2 + $0x78] sm:$0xff] %vm1035_vm8, %v1018_v15 }
 0x17d   : > { %v1083_v16 = vpop.permute.xlu0 %1082  ;;  %v1085_v19 = vpop.permute.xlu1 %1084 }
 0x17e   : > { %1117 = vst.msk [vmem:[#allocation2 + $0x70] sm:$0xff] %vm1102_vm9, %v1083_v16  ;;  %1118 = vst.msk [vmem:[#allocation2 + $0x78] sm:$0xff] %vm1102_vm9, %v1085_v19 }
 0x181   : > { %v1160_v20 = vpop.permute.xlu0 %1159  ;;  %v1162_v22 = vpop.permute.xlu1 %1161 }
 0x182   : > { %1194 = vst.msk [vmem:[#allocation2 + $0x70] sm:$0xff] %vm1179_vm10, %v1160_v20  ;;  %1195 = vst.msk [vmem:[#allocation2 + $0x78] sm:$0xff] %vm1179_vm10, %v1162_v22 }
 0x185   : > { %v1830_v23 = vpop.f32.mrb[0].mxu0  ;;  %v1234_v24 = vpop.permute.xlu0 %1233 }
 0x186   : > { %v1409_v21 = vadd.f32 %v1830_v23, %v2514_v2  ;;  %1268 = vst.msk [vmem:[#allocation2 + $0x70] sm:$0xff] %vm1253_vm11, %v1234_v24  ;;  %v1236_v25 = vpop.permute.xlu1 %1235  ;;  %v1400_v61 = vpop.f32.mrb[1].mxu0 }
 0x187   : > { %1269 = vst.msk [vmem:[#allocation2 + $0x78] sm:$0xff] %vm1253_vm11, %v1236_v25  ;;  %v1401_v26 = vadd.f32 %v2514_v2, %v1400_v61  ;;  %v1831_v27 = vpop.f32.mrb[2].mxu0 }
 0x188   : > { %1529 = vst [vmem:[%s2519_s14 + $0x10] sm:$0xff] %v1409_v21  ;;  %v1412_v3 = vadd.f32 %v1831_v27, %v2514_v2  ;;  %v1403_v29 = vpop.f32.mrb[3].mxu0  ;;  %v1599_v1 = vmul.f32 %v1409_v21, %v1409_v21 }
 0x189   : > { %1527 = vst [vmem:[%s2519_s14] sm:$0xff] %v1401_v26  ;;  %v1404_v30 = vadd.f32 %v2514_v2, %v1403_v29  ;;  %v1597_v31 = vmul.f32 %v1401_v26, %v1401_v26 }
 0x18a   : > { %1530 = vst [vmem:[%s2519_s14 + $0x18] sm:$0xff] %v1412_v3  ;;  %v1600_v38 = vmul.f32 %v1412_v3, %v1412_v3 }
 0x18b   : > { %1528 = vst [vmem:[%s2519_s14 + $0x8] sm:$0xff] %v1404_v30  ;;  %v1559_v32 = vadd.f32 %v1404_v30, %v1401_v26  ;;  %v1598_v33 = vmul.f32 %v1404_v30, %v1404_v30 }
 0x18d   : > { %v1560_v34 = vadd.f32 %v1559_v32, %v1409_v21  ;;  %v1629_v35 = vadd.f32 %v1598_v33, %v1597_v31  ;;  %v1284_v36 = vld [vmem:[#allocation2 + $0x70] sm:$0xff] }
 0x18e   : > { %1856 = vmatprep.mubr.msk.bf16.mxu1 %vm1313_vm12, %v1284_v36  ;;  %v1285_v37 = vld [vmem:[#allocation2 + $0x78] sm:$0xff] }
 0x18f   : > { %v1630_v39 = vadd.f32 %v1629_v35, %v1599_v1  ;;  %1857 = vmatmul.mubr.msk.bf16.gmra.mrb[12].mxu1 %vm1313_vm12, %v1285_v37  ;;  %v1561_v28 = vadd.f32 %v1560_v34, %v1412_v3 }
 0x191   : > { %v1631_v40 = vadd.f32 %v1630_v39, %v1600_v38 }
 0x1a5   : > { %v1834_v41 = vpop.f32.mrb[4].mxu0 }
 0x1a6   : > { %v1425_v43 = vadd.f32 %v1834_v41, %v2514_v2  ;;  %v1416_v44 = vpop.f32.mrb[5].mxu0 }
 0x1a7   : > { %v1417_v46 = vadd.f32 %v2514_v2, %v1416_v44  ;;  %v1835_v47 = vpop.f32.mrb[6].mxu0 }
 0x1a8   : > { %1533 = vst [vmem:[%s2519_s14 + $0x30] sm:$0xff] %v1425_v43  ;;  %v1428_v48 = vadd.f32 %v1835_v47, %v2514_v2  ;;  %v1419_v63 = vpop.f32.mrb[7].mxu0  ;;  %v1603_v54 = vmul.f32 %v1425_v43, %v1425_v43 }
 0x1a9   : > { %1531 = vst [vmem:[%s2519_s14 + $0x20] sm:$0xff] %v1417_v46  ;;  %v1562_v49 = vadd.f32 %v1561_v28, %v1417_v46  ;;  %v1601_v50 = vmul.f32 %v1417_v46, %v1417_v46  ;;  %v1420_v17 = vadd.f32 %v2514_v2, %v1419_v63 }
 0x1aa   : > { %1534 = vst [vmem:[%s2519_s14 + $0x38] sm:$0xff] %v1428_v48  ;;  %v1604_v57 = vmul.f32 %v1428_v48, %v1428_v48 }
 0x1ab   : > { %v1632_v45 = vadd.f32 %v1631_v40, %v1601_v50  ;;  %1532 = vst [vmem:[%s2519_s14 + $0x28] sm:$0xff] %v1420_v17  ;;  %v1563_v51 = vadd.f32 %v1562_v49, %v1420_v17  ;;  %v1602_v53 = vmul.f32 %v1420_v17, %v1420_v17 }
 0x1ad   : > { %v1564_v55 = vadd.f32 %v1563_v51, %v1425_v43  ;;  %v1633_v56 = vadd.f32 %v1632_v45, %v1602_v53 }
 0x1af   : > { %v1634_v58 = vadd.f32 %v1633_v56, %v1603_v54  ;;  %v1565_v59 = vadd.f32 %v1564_v55, %v1428_v48 }
 0x1b1   : > { %v1635_v9 = vadd.f32 %v1634_v58, %v1604_v57 }
 0x1c5   : > { %v1838_v18 = vpop.f32.mrb[8].mxu0 }
 0x1c6   : > { %v1441_v60 = vadd.f32 %v1838_v18, %v2514_v2  ;;  %v1432_v62 = vpop.f32.mrb[9].mxu0 }
 0x1c7   : > { %v1433_v0 = vadd.f32 %v2514_v2, %v1432_v62  ;;  %v1839_v4 = vpop.f32.mrb[10].mxu0 }
 0x1c8   : > { %1537 = vst [vmem:[%s2519_s14 + $0x50] sm:$0xff] %v1441_v60  ;;  %v1444_v5 = vadd.f32 %v1839_v4, %v2514_v2  ;;  %v1435_v6 = vpop.f32.mrb[11].mxu0  ;;  %v1607_v12 = vmul.f32 %v1441_v60, %v1441_v60 }
 0x1c9   : > { %1535 = vst [vmem:[%s2519_s14 + $0x40] sm:$0xff] %v1433_v0  ;;  %v1566_v7 = vadd.f32 %v1565_v59, %v1433_v0  ;;  %v1605_v8 = vmul.f32 %v1433_v0, %v1433_v0  ;;  %v1436_v10 = vadd.f32 %v2514_v2, %v1435_v6 }
 0x1ca   : > { %1538 = vst [vmem:[%s2519_s14 + $0x58] sm:$0xff] %v1444_v5  ;;  %v1608_v15 = vmul.f32 %v1444_v5, %v1444_v5 }
 0x1cb   : > { %v1636_v11 = vadd.f32 %v1635_v9, %v1605_v8  ;;  %1536 = vst [vmem:[%s2519_s14 + $0x48] sm:$0xff] %v1436_v10  ;;  %v1567_v52 = vadd.f32 %v1566_v7, %v1436_v10  ;;  %v1606_v42 = vmul.f32 %v1436_v10, %v1436_v10 }
 0x1cd   : > { %v1568_v13 = vadd.f32 %v1567_v52, %v1441_v60  ;;  %v1637_v14 = vadd.f32 %v1636_v11, %v1606_v42 }
 0x1cf   : > { %v1638_v16 = vadd.f32 %v1637_v14, %v1607_v12  ;;  %v1569_v19 = vadd.f32 %v1568_v13, %v1444_v5 }
 0x1d1   : > { %v1639_v20 = vadd.f32 %v1638_v16, %v1608_v15 }
 0x1e5   : > { %v1842_v22 = vpop.f32.mrb[12].mxu0 }
 0x1e6   : > { %v1457_v23 = vadd.f32 %v1842_v22, %v2514_v2  ;;  %v1448_v24 = vpop.f32.mrb[13].mxu0 }
 0x1e7   : > { %v1449_v21 = vadd.f32 %v2514_v2, %v1448_v24  ;;  %v1843_v25 = vpop.f32.mrb[14].mxu0 }
 0x1e8   : > { %1541 = vst [vmem:[%s2519_s14 + $0x70] sm:$0xff] %v1457_v23  ;;  %v1460_v61 = vadd.f32 %v1843_v25, %v2514_v2  ;;  %v1451_v26 = vpop.f32.mrb[15].mxu0  ;;  %v1611_v33 = vmul.f32 %v1457_v23, %v1457_v23 }
 0x1e9   : > { %1539 = vst [vmem:[%s2519_s14 + $0x60] sm:$0xff] %v1449_v21  ;;  %v1570_v27 = vadd.f32 %v1569_v19, %v1449_v21  ;;  %v1609_v3 = vmul.f32 %v1449_v21, %v1449_v21  ;;  %v1452_v29 = vadd.f32 %v2514_v2, %v1451_v26 }
 0x1ea   : > { %1542 = vst [vmem:[%s2519_s14 + $0x78] sm:$0xff] %v1460_v61  ;;  %v1612_v35 = vmul.f32 %v1460_v61, %v1460_v61 }
 0x1eb   : > { %v1640_v30 = vadd.f32 %v1639_v20, %v1609_v3  ;;  %1540 = vst [vmem:[%s2519_s14 + $0x68] sm:$0xff] %v1452_v29  ;;  %v1571_v31 = vadd.f32 %v1570_v27, %v1452_v29  ;;  %v1610_v32 = vmul.f32 %v1452_v29, %v1452_v29 }
 0x1ed   : > { %v1572_v1 = vadd.f32 %v1571_v31, %v1457_v23  ;;  %v1641_v34 = vadd.f32 %v1640_v30, %v1610_v32 }
 0x1ef   : > { %v1642_v36 = vadd.f32 %v1641_v34, %v1611_v33  ;;  %v1573_v37 = vadd.f32 %v1572_v1, %v1460_v61 }
 0x1f1   : > { %v1643_v38 = vadd.f32 %v1642_v36, %v1612_v35 }
 0x205   : > { %v1846_v39 = vpop.f32.mrb[0].mxu1 }
 0x206   : > { %v1473_v28 = vadd.f32 %v1846_v39, %v2514_v2  ;;  %v1464_v40 = vpop.f32.mrb[1].mxu1 }
 0x207   : > { %v1465_v41 = vadd.f32 %v2514_v2, %v1464_v40  ;;  %v1847_v43 = vpop.f32.mrb[2].mxu1 }
 0x208   : > { %1545 = vst [vmem:[%s2519_s14 + $0x90] sm:$0xff] %v1473_v28  ;;  %v1476_v44 = vadd.f32 %v1847_v43, %v2514_v2  ;;  %v1467_v46 = vpop.f32.mrb[3].mxu1  ;;  %v1615_v45 = vmul.f32 %v1473_v28, %v1473_v28 }
 0x209   : > { %1543 = vst [vmem:[%s2519_s14 + $0x80] sm:$0xff] %v1465_v41  ;;  %v1574_v47 = vadd.f32 %v1573_v37, %v1465_v41  ;;  %v1613_v48 = vmul.f32 %v1465_v41, %v1465_v41  ;;  %v1468_v63 = vadd.f32 %v2514_v2, %v1467_v46 }
 0x20a   : > { %1546 = vst [vmem:[%s2519_s14 + $0x98] sm:$0xff] %v1476_v44  ;;  %v1616_v54 = vmul.f32 %v1476_v44, %v1476_v44 }
 0x20b   : > { %v1644_v49 = vadd.f32 %v1643_v38, %v1613_v48  ;;  %1544 = vst [vmem:[%s2519_s14 + $0x88] sm:$0xff] %v1468_v63  ;;  %v1575_v50 = vadd.f32 %v1574_v47, %v1468_v63  ;;  %v1614_v17 = vmul.f32 %v1468_v63, %v1468_v63 }
 0x20d   : > { %v1576_v51 = vadd.f32 %v1575_v50, %v1473_v28  ;;  %v1645_v53 = vadd.f32 %v1644_v49, %v1614_v17 }
 0x20f   : > { %v1646_v55 = vadd.f32 %v1645_v53, %v1615_v45  ;;  %v1577_v56 = vadd.f32 %v1576_v51, %v1476_v44 }
 0x211   : > { %v1647_v57 = vadd.f32 %v1646_v55, %v1616_v54 }
 0x225   : > { %v1850_v58 = vpop.f32.mrb[4].mxu1 }
 0x226   : > { %v1489_v59 = vadd.f32 %v1850_v58, %v2514_v2  ;;  %v1480_v9 = vpop.f32.mrb[5].mxu1 }
 0x227   : > { %v1481_v18 = vadd.f32 %v2514_v2, %v1480_v9  ;;  %v1851_v60 = vpop.f32.mrb[6].mxu1 }
 0x228   : > { %1549 = vst [vmem:[%s2519_s14 + $0xb0] sm:$0xff] %v1489_v59  ;;  %v1492_v62 = vadd.f32 %v1851_v60, %v2514_v2  ;;  %v1483_v0 = vpop.f32.mrb[7].mxu1  ;;  %v1619_v11 = vmul.f32 %v1489_v59, %v1489_v59 }
 0x229   : > { %1547 = vst [vmem:[%s2519_s14 + $0xa0] sm:$0xff] %v1481_v18  ;;  %v1578_v4 = vadd.f32 %v1577_v56, %v1481_v18  ;;  %v1617_v5 = vmul.f32 %v1481_v18, %v1481_v18  ;;  %v1484_v6 = vadd.f32 %v2514_v2, %v1483_v0 }
 0x22a   : > { %1550 = vst [vmem:[%s2519_s14 + $0xb8] sm:$0xff] %v1492_v62  ;;  %v1620_v12 = vmul.f32 %v1492_v62, %v1492_v62 }
 0x22b   : > { %v1648_v7 = vadd.f32 %v1647_v57, %v1617_v5  ;;  %1548 = vst [vmem:[%s2519_s14 + $0xa8] sm:$0xff] %v1484_v6  ;;  %v1579_v8 = vadd.f32 %v1578_v4, %v1484_v6  ;;  %v1618_v10 = vmul.f32 %v1484_v6, %v1484_v6 }
 0x22d   : > { %v1580_v52 = vadd.f32 %v1579_v8, %v1489_v59  ;;  %v1649_v42 = vadd.f32 %v1648_v7, %v1618_v10 }
 0x22f   : > { %v1650_v13 = vadd.f32 %v1649_v42, %v1619_v11  ;;  %v1581_v14 = vadd.f32 %v1580_v52, %v1492_v62 }
 0x231   : > { %v1651_v15 = vadd.f32 %v1650_v13, %v1620_v12 }
 0x245   : > { %v1854_v16 = vpop.f32.mrb[8].mxu1 }
 0x246   : > { %v1505_v19 = vadd.f32 %v1854_v16, %v2514_v2  ;;  %v1496_v20 = vpop.f32.mrb[9].mxu1 }
 0x247   : > { %v1497_v22 = vadd.f32 %v2514_v2, %v1496_v20  ;;  %v1855_v23 = vpop.f32.mrb[10].mxu1 }
 0x248   : > { %1553 = vst [vmem:[%s2519_s14 + $0xd0] sm:$0xff] %v1505_v19  ;;  %v1508_v24 = vadd.f32 %v1855_v23, %v2514_v2  ;;  %v1499_v21 = vpop.f32.mrb[11].mxu1  ;;  %v1623_v30 = vmul.f32 %v1505_v19, %v1505_v19 }
 0x249   : > { %1551 = vst [vmem:[%s2519_s14 + $0xc0] sm:$0xff] %v1497_v22  ;;  %v1582_v25 = vadd.f32 %v1581_v14, %v1497_v22  ;;  %v1621_v61 = vmul.f32 %v1497_v22, %v1497_v22  ;;  %v1500_v26 = vadd.f32 %v2514_v2, %v1499_v21 }
 0x24a   : > { %1554 = vst [vmem:[%s2519_s14 + $0xd8] sm:$0xff] %v1508_v24  ;;  %v1624_v33 = vmul.f32 %v1508_v24, %v1508_v24 }
 0x24b   : > { %v1652_v27 = vadd.f32 %v1651_v15, %v1621_v61  ;;  %1552 = vst [vmem:[%s2519_s14 + $0xc8] sm:$0xff] %v1500_v26  ;;  %v1583_v3 = vadd.f32 %v1582_v25, %v1500_v26  ;;  %v1622_v29 = vmul.f32 %v1500_v26, %v1500_v26 }
 0x24d   : > { %v1584_v31 = vadd.f32 %v1583_v3, %v1505_v19  ;;  %v1653_v32 = vadd.f32 %v1652_v27, %v1622_v29 }
 0x24f   : > { %v1654_v1 = vadd.f32 %v1653_v32, %v1623_v30  ;;  %v1585_v34 = vadd.f32 %v1584_v31, %v1508_v24 }
 0x251   : > { %v1655_v35 = vadd.f32 %v1654_v1, %v1624_v33 }
 0x262   : > { %v1858_v36 = vpop.f32.mrb[12].mxu1 }
 0x263   : > { %v1521_v37 = vadd.f32 %v1858_v36, %v2514_v2  ;;  %v1512_v38 = vpop.f32.mrb[13].mxu1 }
 0x264   : > { %v1513_v39 = vadd.f32 %v2514_v2, %v1512_v38  ;;  %v1859_v28 = vpop.f32.mrb[14].mxu1 }
 0x265   : > { %1557 = vst [vmem:[%s2519_s14 + $0xf0] sm:$0xff] %v1521_v37  ;;  %v1524_v40 = vadd.f32 %v1859_v28, %v2514_v2  ;;  %v1515_v41 = vpop.f32.mrb[15].mxu1  ;;  %v1627_v49 = vmul.f32 %v1521_v37, %v1521_v37 }
 0x266   : > { %1555 = vst [vmem:[%s2519_s14 + $0xe0] sm:$0xff] %v1513_v39  ;;  %v1586_v43 = vadd.f32 %v1585_v34, %v1513_v39  ;;  %v1625_v44 = vmul.f32 %v1513_v39, %v1513_v39  ;;  %v1516_v46 = vadd.f32 %v2514_v2, %v1515_v41 }
 0x267   : > { %1558 = vst [vmem:[%s2519_s14 + $0xf8] sm:$0xff] %v1524_v40  ;;  %v1628_v45 = vmul.f32 %v1524_v40, %v1524_v40 }
 0x268   : > { %v1656_v47 = vadd.f32 %v1655_v35, %v1625_v44  ;;  %1556 = vst [vmem:[%s2519_s14 + $0xe8] sm:$0xff] %v1516_v46  ;;  %v1587_v48 = vadd.f32 %v1586_v43, %v1516_v46  ;;  %v1626_v63 = vmul.f32 %v1516_v46, %v1516_v46 }
 0x26a   : > { %v1588_v50 = vadd.f32 %v1587_v48, %v1521_v37  ;;  %v1657_v17 = vadd.f32 %v1656_v47, %v1626_v63 }
 0x26c   : > { %v1589_v51 = vadd.f32 %v1588_v50, %v1524_v40  ;;  %v1658_v53 = vadd.f32 %v1657_v17, %v1627_v49 }
 0x26e   : > { %v1590_v54 = vrot.slane %v1589_v51, 4  ;;  %v1659_v55 = vadd.f32 %v1658_v53, %v1628_v45 }
 0x270   : > { %v1591_v56 = vadd.f32 %v1590_v54, %v1589_v51  ;;  %v1660_v57 = vrot.slane %v1659_v55, 4 }
 0x272   : > { %v1592_v58 = vrot.slane %v1591_v56, 2  ;;  %v1661_v59 = vadd.f32 %v1660_v57, %v1659_v55 }
 0x274   : > { %v1593_v2 = vadd.f32 %v1592_v58, %v1591_v56  ;;  %v1662_v9 = vrot.slane %v1661_v59, 2 }
 0x276   : > { %v1594_v18 = vrot.slane %v1593_v2, 1  ;;  %v1663_v60 = vadd.f32 %v1662_v9, %v1661_v59 }
 0x278   : > { %v1595_v62 = vadd.f32 %v1594_v18, %v1593_v2  ;;  %v1664_v0 = vrot.slane %v1663_v60, 1 }
 0x27a   : > { %1596 = vst [vmem:[%s208_s20] sm:$0x1] %v1595_v62  ;;  %v1665_v4 = vadd.f32 %v1664_v0, %v1663_v60 }
 0x27c   : > { %1666 = vst [vmem:[%s208_s20 + $0x1] sm:$0x1] %v1665_v4 }
 0x27d PF: > { %s15_s15 = sadd.s32 1, %s1929_s15  }
 0x27e   : > { %p12_p4 = scmp.ge.s32.totalorder %s15_s15, 4  }
 0x280   :  { %14 = sbr.rel (!%p12_p4) target bundleno = 1 (0x1), region = 74 }

</bundles_post_ra>
